<compile_context>
chip_gen: v7x
topology: tpu7x:2x2x1
jax: 0.10.0
libtpu: 0.0.40
codegen_flags: <defaults>
</compile_context>

<pallas_src>
import functools

import numpy as np
import jax
import jax.numpy as jnp
from jax.experimental import pallas as pl
from jax.experimental.pallas import tpu as pltpu


def _std_wd_kernel(x_ref, w_ref, out_ref, base_ref, *, inv_2th):
    x = x_ref[...].astype(jnp.float32)
    w = w_ref[...]

    # W already folds: 1/n_steps scaling, the (n_steps-1)//2 re-alignment of
    # window starts to padded output positions, and the zero-padding mask.
    mean = jnp.dot(x, w, preferred_element_type=jnp.float32,
                   precision=jax.lax.Precision.HIGHEST)
    msq = jnp.dot(x * x, w, preferred_element_type=jnp.float32,
                  precision=jax.lax.Precision.HIGHEST)

    var = jnp.maximum(msq - mean * mean, 0.0)
    sigma_base = jnp.sqrt(var)  # biased (ddof=0) windowed std, zero at padded positions

    sigma_n = sigma_base * inv_2th
    res = jnp.minimum(jnp.round(sigma_n), 1.0)  # torch.round is half-to-even; so is jnp.round
    res = jnp.maximum(res, 0.0)
    res = res - sigma_n
    # TODO(synk): res.detach() is a straight-through-estimator trick; it only
    # changes gradients, the forward value below is exact.
    out_ref[...] = res + sigma_n
    base_ref[...] = sigma_base


def _window_matrix(t_valid, t_pad, n_steps):
    """Banded [t_pad, t_pad] matrix folding window-sum, 1/n, shift and padding."""
    p = (n_steps - 1) // 2
    t_in = np.arange(t_pad)[:, None]
    t_out = np.arange(t_pad)[None, :]
    valid = (t_out >= p) & (t_out <= p + t_valid - n_steps)
    band = (t_in >= t_out - p) & (t_in <= t_out - p + (n_steps - 1))
    return np.where(valid & band, 1.0 / n_steps, 0.0).astype(np.float32)


def _pick_block_b(b, t_pad, target_bytes=1 << 20):
    """Largest block_b dividing b, a multiple of 8 (or == b), with ~1 MiB blocks."""
    cap = max(1, target_bytes // (4 * t_pad))
    for cand in range(min(b, cap), 0, -1):
        if b % cand == 0 and (cand % 8 == 0 or cand == b):
            return cand
    return b


def std_wet_dry(x, th, n_steps, *, block_b=None):
    """Pallas implementation of STDWetDry.forward.  x: [B, T] float32."""
    B, T = x.shape
    n_steps = int(n_steps)
    if T < n_steps:
        raise ValueError("time length must be >= n_steps")

    # Pad time to a multiple of 128 so stores are lane-dense; W masks the padded
    # lanes so they contribute nothing and their outputs are exactly 0.
    T_pad = ((T + 127) // 128) * 128
    if T_pad != T:
        x = jnp.pad(x, ((0, 0), (0, T_pad - T)))
    w = jnp.asarray(_window_matrix(T, T_pad, n_steps))

    if block_b is None:
        block_b = _pick_block_b(B, T_pad)
    assert B % block_b == 0 and (block_b % 8 == 0 or block_b == B)

    inv_2th = 1.0 / (2.0 * float(th))
    kernel = functools.partial(_std_wd_kernel, inv_2th=inv_2th)

    # TODO(synk): for very large T, tile the time axis with an (n_steps-1)-lane
    # halo and a per-tile band matrix instead of one global T_pad x T_pad W.
    out1, base = pl.pallas_call(
        kernel,
        out_shape=(
            jax.ShapeDtypeStruct((B, T_pad), jnp.float32),
            jax.ShapeDtypeStruct((B, T_pad), jnp.float32),
        ),
        grid=(B // block_b,),
        in_specs=[
            pl.BlockSpec((block_b, T_pad), lambda i: (i, 0)),
            pl.BlockSpec((T_pad, T_pad), lambda i: (0, 0)),  # constant block: fetched once
        ],
        out_specs=(
            pl.BlockSpec((block_b, T_pad), lambda i: (i, 0)),
            pl.BlockSpec((block_b, T_pad), lambda i: (i, 0)),
        ),
        compiler_params=pltpu.CompilerParams(dimension_semantics=("parallel",)),
    )(x, w)

    if T_pad != T:
        out1, base = out1[:, :T], base[:, :T]
    return out1, base


if __name__ == "__main__":
    B, T = 16, 256
    n_steps = 9
    th = 0.5

    key = jax.random.PRNGKey(0)
    x = jax.random.normal(key, (B, T), dtype=jnp.float32)

    # block_b=8 -> grid=(2,) with "parallel" semantics (exercises the batch tiling).
    out1, base = std_wet_dry(x, th, n_steps, block_b=8)
    out1, base = jax.block_until_ready((out1, base))

    # Pure-numpy reference mirroring the PyTorch forward (biased std, zero padding).
    xn = np.asarray(x, dtype=np.float32)
    sig = np.stack(
        [xn[:, max(0, i - n_steps + 1):i + 1].std(axis=1) for i in range(n_steps - 1, T)],
        axis=1,
    ).astype(np.float32)
    p = (n_steps - 1) // 2
    base_ref = np.concatenate(
        [np.zeros((B, p), np.float32), sig, np.zeros((B, n_steps - 1 - p), np.float32)],
        axis=1,
    )
    sn = base_ref / (2.0 * th)
    res_ref = np.maximum(np.minimum(np.round(sn), 1.0), 0.0)
    out1_ref = (res_ref - sn) + sn

    np.testing.assert_allclose(np.asarray(base), base_ref, rtol=5e-4, atol=1e-4)
    # round() is discontinuous at half-integers; exclude reference elements whose
    # sigma_n sits within 1e-3 of a boundary (a tiny f32-vs-MXU numeric difference
    # could legitimately flip the rounding there without being a kernel bug).
    safe = np.abs((sn % 1.0) - 0.5) > 1e-3
    np.testing.assert_allclose(np.asarray(out1)[safe], out1_ref[safe], rtol=5e-4, atol=1e-4)
    print("KERNEL_OK")
</pallas_src>

<mosaic_0001>
module attributes {stable_mosaic.version = 11 : i64} {
  func.func @_std_wd_kernel(%arg0: i32, %arg1: memref<8x256xf32, #tpu.memory_space<vmem>>, %arg2: memref<256x256xf32, #tpu.memory_space<vmem>>, %arg3: memref<8x256xf32, #tpu.memory_space<vmem>>, %arg4: memref<8x256xf32, #tpu.memory_space<vmem>>) attributes {dimension_semantics = [#tpu.dimension_semantics<parallel>], iteration_bounds = array<i64: 2>, scalar_prefetch = 0 : i64, scratch_operands = 0 : i64, tpu.core_type = #tpu.core_type<tc>, window_params = [{transform_indices = @transform_0, window_bounds = array<i64: 8, 256>}, {pipeline_mode = #tpu.pipeline_mode<synchronous>, transform_indices = @transform_1, window_bounds = array<i64: 256, 256>}, {transform_indices = @transform_2, window_bounds = array<i64: 8, 256>}, {transform_indices = @transform_3, window_bounds = array<i64: 8, 256>}]} {
    %c0 = arith.constant 0 : index
    %c0_0 = arith.constant 0 : index
    %0 = vector.load %arg1[%c0, %c0_0] : memref<8x256xf32, #tpu.memory_space<vmem>>, vector<8x256xf32>
    %c0_1 = arith.constant 0 : index
    %c0_2 = arith.constant 0 : index
    %1 = vector.load %arg2[%c0_1, %c0_2] : memref<256x256xf32, #tpu.memory_space<vmem>>, vector<256x256xf32>
    %cst = arith.constant dense<0.000000e+00> : vector<8x256xf32>
    %2 = tpu.matmul %0, %1, %cst {dimension_numbers = #tpu.dot_dimension_numbers<[1], [0], [0], [1], [0, 0, 1, 1], [], []>, precision = #tpu.contract_precision<fp32>} : vector<8x256xf32>, vector<256x256xf32>, vector<8x256xf32> -> vector<8x256xf32>
    %3 = arith.mulf %0, %0 : vector<8x256xf32>
    %cst_3 = arith.constant dense<0.000000e+00> : vector<8x256xf32>
    %4 = tpu.matmul %3, %1, %cst_3 {dimension_numbers = #tpu.dot_dimension_numbers<[1], [0], [0], [1], [0, 0, 1, 1], [], []>, precision = #tpu.contract_precision<fp32>} : vector<8x256xf32>, vector<256x256xf32>, vector<8x256xf32> -> vector<8x256xf32>
    %5 = arith.mulf %2, %2 : vector<8x256xf32>
    %6 = arith.subf %4, %5 : vector<8x256xf32>
    %cst_4 = arith.constant 0.000000e+00 : f32
    %7 = vector.broadcast %cst_4 : f32 to vector<8x256xf32>
    %8 = arith.maximumf %6, %7 : vector<8x256xf32>
    %9 = math.sqrt %8 : vector<8x256xf32>
    %cst_5 = arith.constant 1.000000e+00 : f32
    %10 = vector.broadcast %cst_5 : f32 to vector<8x256xf32>
    %11 = arith.mulf %9, %10 : vector<8x256xf32>
    %12 = math.roundeven %11 : vector<8x256xf32>
    %cst_6 = arith.constant 1.000000e+00 : f32
    %13 = vector.broadcast %cst_6 : f32 to vector<8x256xf32>
    %14 = arith.minimumf %12, %13 : vector<8x256xf32>
    %cst_7 = arith.constant 0.000000e+00 : f32
    %15 = vector.broadcast %cst_7 : f32 to vector<8x256xf32>
    %16 = arith.maximumf %14, %15 : vector<8x256xf32>
    %17 = arith.subf %16, %11 : vector<8x256xf32>
    %18 = arith.addf %17, %11 : vector<8x256xf32>
    %c0_8 = arith.constant 0 : index
    %c0_9 = arith.constant 0 : index
    %19 = vector.load %arg3[%c0_8, %c0_9] : memref<8x256xf32, #tpu.memory_space<vmem>>, vector<8x256xf32>
    tpu.vector_store %arg3[%c0_8, %c0_9], %18 {strides = array<i32>} : memref<8x256xf32, #tpu.memory_space<vmem>>, vector<8x256xf32>,
    %c0_10 = arith.constant 0 : index
    %c0_11 = arith.constant 0 : index
    %20 = vector.load %arg4[%c0_10, %c0_11] : memref<8x256xf32, #tpu.memory_space<vmem>>, vector<8x256xf32>
    tpu.vector_store %arg4[%c0_10, %c0_11], %9 {strides = array<i32>} : memref<8x256xf32, #tpu.memory_space<vmem>>, vector<8x256xf32>,
    return
  }
  func.func @transform_0(%arg0: i32) -> (i32, i32) {
    %c0_i32 = arith.constant 0 : i32
    %c0_i32_0 = arith.constant 0 : i32
    return %arg0, %c0_i32 : i32, i32
  }
  func.func @transform_1(%arg0: i32) -> (i32, i32) {
    %c0_i32 = arith.constant 0 : i32
    %c0_i32_0 = arith.constant 0 : i32
    %c0_i32_1 = arith.constant 0 : i32
    return %c0_i32, %c0_i32_0 : i32, i32
  }
  func.func @transform_2(%arg0: i32) -> (i32, i32) {
    %c0_i32 = arith.constant 0 : i32
    %c0_i32_0 = arith.constant 0 : i32
    return %arg0, %c0_i32 : i32, i32
  }
  func.func @transform_3(%arg0: i32) -> (i32, i32) {
    %c0_i32 = arith.constant 0 : i32
    %c0_i32_0 = arith.constant 0 : i32
    return %arg0, %c0_i32 : i32, i32
  }
}

</mosaic_0001>

<bundles_post_ra>
// kernel: tpu_custom_call.1
= control target key start
LH: loop header
LB: loop body
LE: loop exit
PB: predicated region body
PF: predicated region fallthrough
CT: control target
= control target key end

     0   :  { %9 = vsyncpa [#allocation3], 0  ;;  %s5983_s0 = inlined_call_operand.hbm [shape: f32[16,256], index: 0, kind: input, shape index: {}]   ;;  %s5984_s1 = inlined_call_operand.hbm [shape: f32[256,256], index: 1, kind: input, shape index: {}]   ;;  %s5985_s2 = inlined_call_operand.hbm [shape: f32[16,256], index: 2, kind: output, shape index: {0}]   ;;  %s5986_s3 = inlined_call_operand.hbm [shape: f32[16,256], index: 3, kind: output, shape index: {1}]  }
   0x1   :  { %11 = vsyncpa [#allocation3 + $0x1], 0 }
   0x2   :  { %12 = vsyncpa [#allocation6], 0 }
   0x3   :  { %13 = vsyncpa [#allocation4], 0 }
   0x4   :  { %15 = vsyncpa [#allocation4 + $0x1], 0 }
   0x5   :  { %16 = vsyncpa [#allocation9], 0 }
   0x6   :  { %18 = vsyncpa [#allocation9 + $0x1], 0  ;;  %s4098_s12 = smov 0   ;;  %s4100_s13 = smov 0  }
   0x7   :  { %s4102_s14 = smov 0   ;;  %s4104_s15 = smov 0  }
   0x8 LB: > { %s4119_s16 = sadd.s32 4294967295, %s4070_s15   ;;  %s3029_s17 = sadd.s32 4294967294, %s4070_s15   ;;  %s4070_s15 = sphi %s4104_s15, %s6750_s15   ;;  %s4066_s14 = sphi %s4102_s14, %s6749_s14   ;;  %s4062_s13 = sphi %s4100_s13, %s6748_s13   ;;  %s4058_s12 = sphi %s4098_s12, %s6747_s12  }
   0x9   : > { %p44_p0 = scmp.ne.s32.totalorder %s4062_s13, %s4058_s12  ;;  %p5987_p1 = scmp.eq.s32.totalorder %s4119_s16, 0 }
   0xa   : > { %p95_p3 = scmp.eq.s32.totalorder %s3029_s17, 1  ;;  %p3030_p5 = scmp.ge.s32.totalorder %s4070_s15, 1 }
   0xb   : > { %p4128_p4 = por %p5987_p1, %p44_p0  ;;  %p128_p7 = scmp.lt.s32.totalorder %s4070_s15, 3 }
   0xc   : > { %p4133_p6 = por %p95_p3, %p44_p0  ;;  %s4072_s21 = smov [#allocation5]  }
   0xd   : > { %s6249_s18 = scalar_select %p4128_p4, 1, 0 }
   0xe   : > { %s6250_s19 = scalar_select %p4133_p6, 1, 0 }
   0xf   : > { %p4138_p8 = pnand %p3030_p5, %p128_p7  ;;  %s140_s22 = sshll.u32 %s4072_s21, 4  ;;  %s4142_s22 = int_to_ptr.vmem [resolvable:$true] %s140_s22 }
  0x10   : > { %s4154_s24 = sadd.s32 1, %s4070_s15   ;;  %s31_s25 = sadd.s32 1, %s4066_s14 }
  0x11   : > { %s6251_s20 = scalar_select %p4138_p8, 1, 0 }
  0x12   : > { %p3852_p9 = pneg %p4138_p8  ;;  %s28_s26 = ssub.s32 %s4070_s15, %s4154_s24 }
  0x13   : > { %s3910_s29 = scalar_lea.hbm %s5984_s1, 8192 }
  0x14   : > { %p4149_p11 = pnand %p3852_p9, %p5987_p1  ;;  %p3911_p12 = scmp.ne.s32.totalorder %s5984_s1, %s3910_s29 }
  0x15   : > { %p3917_p5 = scmp.lt.u32.totalorder %s3910_s29, %s5984_s1 }
  0x16   : > { %p3912_p13 = pneg %p4149_p11 }
  0x18   : > { %p3913_p0 = pnand %p3912_p13, %p3911_p12 }
  0x1a   : > { %p3914_p3 = pneg %p3913_p0 }
  0x1c   : > { %p3919_p7 = pnand %p3917_p5, %p3914_p3 }
  0x1e   : > { %3922 = shalt.err (!%p3919_p7)
}
  0x1f   : > { %s3923_s7 = scalar_lea.vmem %s4142_s22, 8192  ;;  %p3931_p2 = scmp.lt.s32.totalorder %s4142_s22, %s4142_s22 }
  0x20   : > { %p3924_p9 = scmp.ne.s32.totalorder %s4142_s22, %s3923_s7  ;;  %p3932_p6 = scmp.lt.s32.totalorder %s3923_s7, %s3923_s7 }
  0x22   : > { %p3926_p10 = pnand %p3924_p9, %p3912_p13  ;;  %p3933_p4 = por %p3932_p6, %p3931_p2 }
  0x24   : > { %p3927_p1 = pneg %p3926_p10 }
  0x26   : > { %p3934_p8 = pnand %p3933_p4, %p3927_p1 }
  0x28   : > { %3937 = shalt.err (!%p3934_p8)
}
  0x29   : > { %s4073_s8 = smov 256   ;;  %s4074_s9 = smov 16  }
  0x2a   : > { %3855 = dma.hbm_to_vmem [thread:$0]  (!%p4149_p11), %s5984_s1, 8192, %s4142_s22, [#allocation6], %s4073_s8, %s4073_s8, %s4074_s9  }
  0x2b   : > { %p29_p2 = scmp.eq.s32.totalorder %s28_s26, 0  ;;  %p38_p1 = scmp.ne.s32.totalorder %s4066_s14, %s4062_s13 }
  0x2c   : > { %p39_p4 = scmp.eq.s32.totalorder %s4070_s15, 0  ;;  %p3868_p6 = scmp.lt.s32.totalorder %s4070_s15, 2 }
  0x2d   : > { %s4185_s17 = scalar_select %p29_p2, %s4066_s14, %s31_s25  }
  0x2e   : > { %p40_p8 = por %p39_p4, %p38_p1  ;;  %p6253_p10 = scmp.eq.s32.totalorder %s4119_s16, 1 }
  0x2f   : > { %s154_s27 = sand.u32 1, %s4066_s14   ;;  %s3049_s28 = sshll.u32 %s4070_s15, 8 }
  0x30   : > { %p4189_p12 = por %p6253_p10, %p38_p1  ;;  %s3033_s29 = sshll.u32 %s154_s27, 4 }
  0x31   : > { %s4198_s4 = scalar_lea.hbm %s5983_s0, %s3049_s28  ;;  %s158_s22 = scalar_lea.vmem [#allocation2], %s3033_s29 }
  0x32   : > { %s166_s25 = sshll.u32 %s158_s22, 4  ;;  %p4200_p11 = pnand %p3868_p6, %p40_p8  ;;  %s4204_s25 = int_to_ptr.vmem [resolvable:$true] %s166_s25 }
  0x33   : > { %s155_s5 = scalar_lea.sflag [#allocation3], %s154_s27  ;;  %s3938_s6 = scalar_lea.hbm %s4198_s4, 256 }
  0x34   : > { %p3939_p13 = scmp.ne.s32.totalorder %s4198_s4, %s3938_s6  ;;  %p3940_p0 = pneg %p4200_p11 }
  0x35   : > { %s3943_s9 = scalar_lea.hbm %s5983_s0, 512  ;;  %p3944_p7 = scmp.lt.u32.totalorder %s4198_s4, %s5983_s0 }
  0x36   : > { %p3941_p3 = pnand %p3940_p0, %p3939_p13  ;;  %p3945_p9 = scmp.lt.u32.totalorder %s3943_s9, %s3938_s6 }
  0x37   : > { %p3947_p1 = scmp.lt.u32.totalorder %s3938_s6, %s4198_s4 }
  0x38   : > { %p3942_p5 = pneg %p3941_p3  ;;  %p3946_p2 = por %p3945_p9, %p3944_p7 }
  0x3a   : > { %p3948_p4 = por %p3947_p1, %p3946_p2 }
  0x3c   : > { %p3949_p6 = pnand %p3948_p4, %p3942_p5 }
  0x3e   : > { %3952 = shalt.err (!%p3949_p6)
}
  0x3f   : > { %s3953_s27 = scalar_lea.vmem %s4204_s25, 256  ;;  %s4075_s28 = smov [#allocation2]  }
  0x40   : > { %p3954_p8 = scmp.ne.s32.totalorder %s4204_s25, %s3953_s27  ;;  %s3958_s29 = sshll.u32 %s4075_s28, 4  ;;  %s3959_s29 = int_to_ptr.vmem [resolvable:$false] %s3958_s29 }
  0x41   : > { %s3960_s23 = scalar_lea.vmem %s3959_s29, 512  ;;  %p3961_p3 = scmp.lt.s32.totalorder %s4204_s25, %s3959_s29 }
  0x42   : > { %p3956_p10 = pnand %p3954_p8, %p3940_p0  ;;  %p3962_p7 = scmp.lt.s32.totalorder %s3960_s23, %s3953_s27 }
  0x44   : > { %p3957_p13 = pneg %p3956_p10  ;;  %p3963_p9 = por %p3962_p7, %p3961_p3 }
  0x46   : > { %p3964_p2 = pnand %p3963_p9, %p3957_p13 }
  0x48   : > { %3967 = shalt.err (!%p3964_p2)
}
  0x49   : > { %3859 = dma.hbm_to_vmem [thread:$0]  (!%p4200_p11), %s4198_s4, 256, %s4204_s25, %s155_s5  }
  0x4a   : > { %p6256_p5 = scmp.ne.s32.totalorder %s6251_s20, 0 }
  0x4c   : > { %175 = sbr.rel (%p6256_p5) target bundleno = 769 (0x301), region = 28 }
  0x53   : > { %s4234_s30 = sand.u32 1, %s4062_s13   ;;  %p6257_p0 = scmp.ne.s32.totalorder %s6249_s18, 0 }
  0x54   : > { %s4237_s22 = sshll.u32 %s4234_s30, 4  ;;  %s178_s6 = scalar_lea.sflag [#allocation3], %s4234_s30 }
  0x55   : > { %s181_s7 = scalar_lea.vmem [#allocation2], %s4237_s22 }
  0x56   : > { %4041 = dma.done.wait (%p6257_p0), %s178_s6, 256  }
  0x57   : > { %4043 = vsyncadd (%p6257_p0), %s178_s6, 4294967040  ;;  %p6258_p11 = scmp.eq.s32.totalorder %s4119_s16, 0 }
  0x59   : > { %4045 = dma.done.wait (%p6258_p11), [#allocation6], 8192   ;;  %p6259_p1 = pmov %p6258_p11 }
  0x5a   : > { %v4249_v0 = vld [vmem:[#allocation5 + $0x8] sm:$0xff]  ;;  %v4251_v1 = vld [vmem:[#allocation5 + $0x18] sm:$0xff]  ;;  %v4253_v2 = vld [vmem:[#allocation5] sm:$0xff]  ;;  %s3050_s18 = sshll.u32 %s4119_s16, 8  ;;  %s212_s20 = scalar_lea.vmem [#allocation8], %s4237_s22 }
  0x5b   : > { %4047 = vsyncadd (%p6259_p1), [#allocation6], 4294959104  ;;  %v6009_v3 = vand.u32 4294901760, %v4249_v0  ;;  %v6008_v4 = vand.u32 4294901760, %v4251_v1  ;;  %v4257_v5 = vld [vmem:[#allocation5 + $0x10] sm:$0xff]  ;;  %v6007_v6 = vand.u32 4294901760, %v4253_v2  ;;  %s5907_s5 = scalar_lea.hbm %s5986_s3, %s3050_s18 }
  0x5c   : > { %v4260_v7 = vld [vmem:[#allocation5 + $0x28] sm:$0xff]  ;;  %v4262_v8 = vld [vmem:[#allocation5 + $0x38] sm:$0xff]  ;;  %v6006_v9 = vand.u32 4294901760, %v4257_v5  ;;  %v4267_v12 = vld [vmem:[#allocation5 + $0x20] sm:$0xff]  ;;  %s2917_s4 = sshll.u32 %s212_s20, 4  ;;  %s2889_s8 = scalar_lea.sflag [#allocation9], %s4234_s30  ;;  %s5909_s4 = int_to_ptr.vmem [resolvable:$true] %s2917_s4 }
  0x5d   : > { %v6005_v10 = vand.u32 4294901760, %v4260_v7  ;;  %v6004_v11 = vand.u32 4294901760, %v4262_v8  ;;  %v4269_v13 = vld [vmem:[#allocation5 + $0x30] sm:$0xff]  ;;  %v4271_v14 = vld [vmem:[#allocation5 + $0x48] sm:$0xff]  ;;  %v4277_v15 = vpack.c.bf16 %v6008_v4, %v6009_v3  ;;  %v6001_v16 = vand.u32 4294901760, %v4267_v12  ;;  %v4281_v18 = vld [vmem:[#allocation5 + $0x58] sm:$0xff] }
  0x5e   : > { %v6000_v17 = vand.u32 4294901760, %v4269_v13  ;;  %v5999_v19 = vand.u32 4294901760, %v4271_v14  ;;  %v4284_v20 = vld [vmem:[#allocation5 + $0x40] sm:$0xff]  ;;  %v4286_v21 = vld [vmem:[#allocation5 + $0x50] sm:$0xff]  ;;  %v4292_v22 = vpack.c.bf16 %v6006_v9, %v6007_v6  ;;  %v5998_v24 = vand.u32 4294901760, %v4281_v18  ;;  %v4301_v25 = vld [vmem:[#allocation5 + $0x68] sm:$0xff] }
  0x5f   : > { %6260 = vst [vmem:[#allocation14_spill] sm:$0xff] %v4277_v15  ;;  %v4298_v23 = vpack.c.bf16 %v6004_v11, %v6005_v10  ;;  %v4303_v26 = vld [vmem:[#allocation5 + $0x78] sm:$0xff]  ;;  %3053 = vmatprep.subr.bf16.mxu0 %v4277_v15  ;;  %3437 = vmatprep.subr.bf16.mxu1 %v4277_v15  ;;  %v5997_v28 = vand.u32 4294901760, %v4284_v20  ;;  %v5996_v29 = vand.u32 4294901760, %v4286_v21  ;;  %v5995_v31 = vand.u32 4294901760, %v4301_v25  ;;  %v4327_v33 = vld [vmem:[#allocation5 + $0x60] sm:$0xff] }
  0x60   : > { %6261 = vst [vmem:[#allocation15_spill] sm:$0xff] %v4292_v22  ;;  %3055 = vmatpush1.bf16.msra.mxu0 %v4292_v22  ;;  %3439 = vmatpush1.bf16.msra.mxu1 %v4292_v22  ;;  %v4313_v27 = vpack.c.bf16 %v6000_v17, %v6001_v16  ;;  %v4323_v30 = vpack.c.bf16 %v5998_v24, %v5999_v19  ;;  %v5992_v32 = vand.u32 4294901760, %v4303_v26  ;;  %v4329_v34 = vld [vmem:[#allocation5 + $0x70] sm:$0xff]  ;;  %v4331_v35 = vld [vmem:[#allocation5 + $0x88] sm:$0xff]  ;;  %v4333_v36 = vld [vmem:[#allocation5 + $0x98] sm:$0xff]  ;;  %v5991_v40 = vand.u32 4294901760, %v4327_v33 }
  0x61   : > { %6262 = vst [vmem:[#allocation16_spill] sm:$0xff] %v4298_v23  ;;  %3057 = vmatprep.subr.bf16.mxu0 %v4298_v23  ;;  %3441 = vmatprep.subr.bf16.mxu1 %v4298_v23  ;;  %v4335_v37 = vld [vmem:[#allocation5 + $0x80] sm:$0xff]  ;;  %v4337_v38 = vld [vmem:[#allocation5 + $0x90] sm:$0xff]  ;;  %v4345_v39 = vpack.c.bf16 %v5996_v29, %v5997_v28  ;;  %v5990_v41 = vand.u32 4294901760, %v4329_v34  ;;  %v5994_v43 = vand.u32 4294901760, %v4331_v35  ;;  %v5993_v44 = vand.u32 4294901760, %v4333_v36 }
  0x62   : > { %6263 = vst [vmem:[#allocation17_spill] sm:$0xff] %v4313_v27  ;;  %6264 = vst [vmem:[#allocation18_spill] sm:$0xff] %v4323_v30  ;;  %v4355_v42 = vpack.c.bf16 %v5992_v32, %v5995_v31  ;;  %v4359_v45 = vld [vmem:[#allocation5 + $0xa8] sm:$0xff]  ;;  %v4361_v46 = vld [vmem:[#allocation5 + $0xb8] sm:$0xff]  ;;  %v6003_v47 = vand.u32 4294901760, %v4335_v37  ;;  %v6002_v48 = vand.u32 4294901760, %v4337_v38 }
  0x63   : > { %6265 = vst [vmem:[#allocation19_spill] sm:$0xff] %v4345_v39  ;;  %v4365_v49 = vld [vmem:[#allocation5 + $0xa0] sm:$0xff]  ;;  %v4367_v50 = vld [vmem:[#allocation5 + $0xb0] sm:$0xff]  ;;  %v4369_v51 = vld [vmem:[#allocation5 + $0xc8] sm:$0xff]  ;;  %v4383_v55 = vpack.c.bf16 %v5990_v41, %v5991_v40  ;;  %v4397_v59 = vpack.c.bf16 %v5993_v44, %v5994_v43  ;;  %v6011_v60 = vand.u32 4294901760, %v4359_v45  ;;  %v6010_v61 = vand.u32 4294901760, %v4361_v46 }
  0x64   : > { %3059 = vmatpush1.bf16.msra.mxu0 %v4313_v27  ;;  %3443 = vmatpush1.bf16.msra.mxu1 %v4313_v27  ;;  %6266 = vst [vmem:[#allocation20_spill] sm:$0xff] %v4355_v42  ;;  %v4371_v52 = vld [vmem:[#allocation5 + $0xd8] sm:$0xff]  ;;  %v4373_v53 = vld [vmem:[#allocation5 + $0xc0] sm:$0xff]  ;;  %v4375_v54 = vld [vmem:[#allocation5 + $0xd0] sm:$0xff]  ;;  %v6015_v62 = vand.u32 4294901760, %v4365_v49  ;;  %v4412_v32 = vpack.c.bf16 %v6002_v48, %v6003_v47  ;;  %v6014_v44 = vand.u32 4294901760, %v4367_v50 }
  0x65   : > { %3061 = vmatprep.subr.bf16.mxu0 %v4323_v30  ;;  %3445 = vmatprep.subr.bf16.mxu1 %v4323_v30  ;;  %6267 = vst [vmem:[#allocation21_spill] sm:$0xff] %v4371_v52  ;;  %6268 = vst [vmem:[#allocation22_spill] sm:$0xff] %v4373_v53  ;;  %v4385_v56 = vld [vmem:[#allocation5 + $0xe8] sm:$0xff]  ;;  %v4387_v57 = vld [vmem:[#allocation5 + $0xf8] sm:$0xff]  ;;  %v6022_v43 = vand.u32 4294901760, %v4369_v51  ;;  %v6020_v31 = vand.u32 4294901760, %v4371_v52  ;;  %v4437_v9 = vpack.c.bf16 %v6010_v61, %v6011_v60 }
  0x66   : > { %6269 = vst [vmem:[#allocation23_spill] sm:$0xff] %v4375_v54  ;;  %6270 = vst [vmem:[#allocation24_spill] sm:$0xff] %v4383_v55  ;;  %v4389_v58 = vld [vmem:[#allocation5 + $0xe0] sm:$0xff]  ;;  %v4402_v63 = vld [vmem:[#allocation5 + $0xf0] sm:$0xff]  ;;  %v6019_v29 = vand.u32 4294901760, %v4373_v53  ;;  %v6018_v28 = vand.u32 4294901760, %v4375_v54  ;;  %v4457_v61 = vpack.c.bf16 %v6014_v44, %v6015_v62 }
  0x67   : > { %6271 = vst [vmem:[#allocation25_spill] sm:$0xff] %v4385_v56  ;;  %6272 = vst [vmem:[#allocation26_spill] sm:$0xff] %v4387_v57  ;;  %v4404_v41 = vld [vmem:[#allocation5 + $0x108] sm:$0xff]  ;;  %v4406_v40 = vld [vmem:[#allocation5 + $0x118] sm:$0xff]  ;;  %v6021_v24 = vand.u32 4294901760, %v4385_v56  ;;  %v4463_v60 = vpack.c.bf16 %v6020_v31, %v6022_v43  ;;  %v6291_v11 = vand.u32 4294901760, %v4387_v57 }
  0x68   : > { %3063 = vmatpush1.bf16.msra.mxu0 %v4345_v39  ;;  %3447 = vmatpush1.bf16.msra.mxu1 %v4345_v39  ;;  %6273 = vst [vmem:[#allocation27_spill] sm:$0xff] %v4389_v58  ;;  %6274 = vst [vmem:[#allocation28_spill] sm:$0xff] %v4397_v59  ;;  %v4421_v17 = vld [vmem:[#allocation5 + $0x100] sm:$0xff]  ;;  %v4423_v16 = vld [vmem:[#allocation5 + $0x110] sm:$0xff]  ;;  %v4469_v10 = vpack.c.bf16 %v6018_v28, %v6019_v29  ;;  %v6296_v28 = vand.u32 4294901760, %v4389_v58  ;;  %v6297_v29 = vand.u32 4294901760, %v4402_v63 }
  0x69   : > { %3065 = vmatprep.subr.bf16.mxu0 %v4355_v42  ;;  %3449 = vmatprep.subr.bf16.mxu1 %v4355_v42  ;;  %6275 = vst [vmem:[#allocation29_spill] sm:$0xff] %v4402_v63  ;;  %6276 = vst [vmem:[#allocation30_spill] sm:$0xff] %v4404_v41  ;;  %v4439_v6 = vld [vmem:[#allocation5 + $0x128] sm:$0xff]  ;;  %v4441_v4 = vld [vmem:[#allocation5 + $0x138] sm:$0xff]  ;;  %v6305_v42 = vand.u32 4294901760, %v4421_v17  ;;  %v6306_v23 = vand.u32 4294901760, %v4423_v16 }
  0x6a   : > { %6277 = vst [vmem:[#allocation31_spill] sm:$0xff] %v4406_v40  ;;  %6278 = vst [vmem:[#allocation32_spill] sm:$0xff] %v4412_v32  ;;  %v4443_v3 = vld [vmem:[#allocation5 + $0x120] sm:$0xff]  ;;  %v4447_v47 = vld [vmem:[#allocation5 + $0x130] sm:$0xff]  ;;  %v4489_v31 = vpack.c.bf16 %v6297_v29, %v6296_v28  ;;  %s3968_s9 = scalar_lea.vmem %s5909_s4, 256  ;;  %s4076_s10 = smov [#allocation8]  }
  0x6b   : > { %6279 = vst [vmem:[#allocation33_spill] sm:$0xff] %v4421_v17  ;;  %6280 = vst [vmem:[#allocation34_spill] sm:$0xff] %v4423_v16  ;;  %v4449_v48 = vld [vmem:[#allocation5 + $0x148] sm:$0xff]  ;;  %v4451_v19 = vld [vmem:[#allocation5 + $0x158] sm:$0xff]  ;;  %v4517_v22 = vpack.c.bf16 %v6306_v23, %v6305_v42  ;;  %v6309_v23 = vand.u32 4294901760, %v4439_v6  ;;  %v6310_v42 = vand.u32 4294901760, %v4441_v4  ;;  %p3969_p4 = scmp.ne.s32.totalorder %s5909_s4, %s3968_s9 }
  0x6c   : > { %3067 = vmatpush1.bf16.msra.mxu0 %v4383_v55  ;;  %3451 = vmatpush1.bf16.msra.mxu1 %v4383_v55  ;;  %6281 = vst [vmem:[#allocation35_spill] sm:$0xff] %v4437_v9  ;;  %6282 = vst [vmem:[#allocation36_spill] sm:$0xff] %v4439_v6  ;;  %v4477_v44 = vld [vmem:[#allocation5 + $0x140] sm:$0xff]  ;;  %v4479_v62 = vld [vmem:[#allocation5 + $0x150] sm:$0xff]  ;;  %v6313_v17 = vand.u32 4294901760, %v4443_v3  ;;  %s3972_s11 = sshll.u32 %s4076_s10, 4  ;;  %s3973_s11 = int_to_ptr.vmem [resolvable:$false] %s3972_s11 }
  0x6d   : > { %3069 = vmatprep.subr.bf16.mxu0 %v4397_v59  ;;  %3453 = vmatprep.subr.bf16.mxu1 %v4397_v59  ;;  %6283 = vst [vmem:[#allocation37_spill] sm:$0xff] %v4441_v4  ;;  %6284 = vst [vmem:[#allocation38_spill] sm:$0xff] %v4443_v3  ;;  %v4475_v59 = vpack.c.bf16 %v6291_v11, %v6021_v24  ;;  %v4481_v55 = vld [vmem:[#allocation5 + $0x168] sm:$0xff]  ;;  %v6299_v11 = vand.u32 4294901760, %v4404_v41  ;;  %v6300_v24 = vand.u32 4294901760, %v4406_v40  ;;  %v4499_v30 = vld [vmem:[#allocation5 + $0x178] sm:$0xff]  ;;  %p3970_p6 = pnand %p3969_p4, %p4189_p12  ;;  %p3975_p10 = scmp.lt.s32.totalorder %s5909_s4, %s3973_s11 }
  0x6e   : > { %6285 = vst [vmem:[#allocation39_spill] sm:$0xff] %v4447_v47  ;;  %6286 = vst [vmem:[#allocation40_spill] sm:$0xff] %v4449_v48  ;;  %v4501_v27 = vld [vmem:[#allocation5 + $0x160] sm:$0xff]  ;;  %v214_v39 = vld [vmem:[%s181_s7 + $0x8] sm:$0xff]  ;;  %s3974_s27 = scalar_lea.vmem %s3973_s11, 512 }
  0x6f   : > { %6287 = vst [vmem:[#allocation41_spill] sm:$0xff] %v4451_v19  ;;  %6288 = vst [vmem:[#allocation42_spill] sm:$0xff] %v4457_v61  ;;  %v4495_v43 = vpack.c.bf16 %v6300_v24, %v6299_v11  ;;  %v4521_v40 = vld [vmem:[#allocation5 + $0x188] sm:$0xff]  ;;  %v4523_v28 = vand.u32 4294901760, %v214_v39  ;;  %v4537_v15 = vld [vmem:[#allocation5 + $0x198] sm:$0xff]  ;;  %v1564_v29 = vmul.f32 %v214_v39, %v214_v39  ;;  %v6314_v24 = vand.u32 4294901760, %v4447_v47  ;;  %p3971_p8 = pneg %p3970_p6  ;;  %p3976_p13 = scmp.lt.s32.totalorder %s3974_s27, %s3968_s9 }
  0x70   : > { %6289 = vst [vmem:[#allocation43_spill] sm:$0xff] %v4463_v60  ;;  %6290 = vst [vmem:[#allocation44_spill] sm:$0xff] %v4469_v10  ;;  %3071 = vmatpush1.bf16.msra.mxu0 %v4412_v32  ;;  %3455 = vmatpush1.bf16.msra.mxu1 %v4412_v32  ;;  %v4503_v32 = vld [vmem:[#allocation5 + $0x170] sm:$0xff]  ;;  %v4539_v16 = vld [vmem:[#allocation5 + $0x180] sm:$0xff]  ;;  %v6350_v53 = vand.u32 4294901760, %v4537_v15 }
  0x71   : > { %6292 = vst [vmem:[#allocation45_spill] sm:$0xff] %v4475_v59  ;;  %6293 = vst [vmem:[#allocation46_spill] sm:$0xff] %v4477_v44  ;;  %3073 = vmatprep.subr.bf16.mxu0 %v4437_v9  ;;  %3457 = vmatprep.subr.bf16.mxu1 %v4437_v9  ;;  %v4535_v9 = vpack.c.bf16 %v6310_v42, %v6309_v23  ;;  %v4542_v11 = vsub.f32 %v214_v39, %v4523_v28  ;;  %v6316_v23 = vand.u32 4294901760, %v4449_v48  ;;  %v4561_v39 = vld [vmem:[#allocation5 + $0x1a8] sm:$0xff]  ;;  %v4656_v56 = vld [vmem:[#allocation5 + $0x1f0] sm:$0xff]  ;;  %p3977_p3 = por %p3976_p13, %p3975_p10 }
  0x72   : > { %6294 = vst [vmem:[#allocation47_spill] sm:$0xff] %v4479_v62  ;;  %6295 = vst [vmem:[#allocation48_spill] sm:$0xff] %v4481_v55  ;;  %v6317_v42 = vand.u32 4294901760, %v4451_v19  ;;  %v4574_v19 = vld [vmem:[#allocation5 + $0x1b8] sm:$0xff]  ;;  %v4582_v47 = vand.u32 4294901760, %v1564_v29 }
  0x73   : > { %6298 = vst [vmem:[#allocation49_spill] sm:$0xff] %v4489_v31  ;;  %6301 = vst [vmem:[#allocation50_spill] sm:$0xff] %v4495_v43  ;;  %p3978_p7 = pnand %p3977_p3, %p3971_p8 }
  0x74   : > { %6302 = vst [vmem:[#allocation51_spill] sm:$0xff] %v4499_v30  ;;  %6303 = vst [vmem:[#allocation52_spill] sm:$0xff] %v4501_v27  ;;  %3075 = vmatpush1.bf16.msra.mxu0 %v4457_v61  ;;  %3459 = vmatpush1.bf16.msra.mxu1 %v4457_v61  ;;  %v4550_v61 = vpack.c.bf16 %v6314_v24, %v6313_v17  ;;  %v4556_v4 = vpack.c.bf16 %v6317_v42, %v6316_v23  ;;  %v6321_v17 = vand.u32 4294901760, %v4477_v44 }
  0x75   : > { %6304 = vst [vmem:[#allocation53_spill] sm:$0xff] %v4503_v32  ;;  %6307 = vst [vmem:[#allocation54_spill] sm:$0xff] %v4517_v22  ;;  %3077 = vmatprep.subr.bf16.mxu0 %v4463_v60  ;;  %3461 = vmatprep.subr.bf16.mxu1 %v4463_v60  ;;  %v6319_v60 = vand.u32 4294901760, %v4249_v0  ;;  %v6322_v24 = vand.u32 4294901760, %v4479_v62  ;;  %v6324_v42 = vand.u32 4294901760, %v4251_v1  ;;  %v6328_v44 = vand.u32 4294901760, %v4499_v30 }
  0x76   : > { %6308 = vst [vmem:[#allocation55_spill] sm:$0xff] %v4523_v28  ;;  %6311 = vst [vmem:[#allocation56_spill] sm:$0xff] %v4535_v9  ;;  %v4559_v28 = vld [vmem:[#allocation5 + $0x190] sm:$0xff]  ;;  %v4616_v41 = vsub.f32 %v1564_v29, %v4582_v47  ;;  %v6339_v30 = vand.u32 4294901760, %v4253_v2 }
  0x77   : > { %6312 = vst [vmem:[#allocation57_spill] sm:$0xff] %v4542_v11  ;;  %6315 = vst [vmem:[#allocation58_spill] sm:$0xff] %v4550_v61  ;;  %v4566_v3 = vsub.f32 %v4249_v0, %v6319_v60  ;;  %v4572_v48 = vpack.c.bf16 %v6322_v24, %v6321_v17  ;;  %v4580_v6 = vsub.f32 %v4251_v1, %v6324_v42  ;;  %v213_v0 = vld [vmem:[%s181_s7] sm:$0xff]  ;;  %v6327_v60 = vand.u32 4294901760, %v4481_v55 }
  0x78   : > { %6318 = vst [vmem:[#allocation59_spill] sm:$0xff] %v4556_v4  ;;  %6326 = vst [vmem:[#allocation63_spill] sm:$0xff] %v4582_v47  ;;  %v6330_v17 = vand.u32 4294901760, %v4501_v27  ;;  %v6331_v24 = vand.u32 4294901760, %v4503_v32  ;;  %v4600_v42 = vld [vmem:[#allocation5 + $0x1a0] sm:$0xff]  ;;  %3079 = vmatpush1.bf16.msra.mxu0 %v4469_v10  ;;  %3463 = vmatpush1.bf16.msra.mxu1 %v4469_v10  ;;  %v4608_v27 = vld [vmem:[#allocation5 + $0x1c8] sm:$0xff]  ;;  %v4637_v58 = vsub.f32 %v4253_v2, %v6339_v30 }
  0x79   : > { %6320 = vst [vmem:[#allocation60_spill] sm:$0xff] %v4566_v3  ;;  %6323 = vst [vmem:[#allocation61_spill] sm:$0xff] %v4572_v48  ;;  %v4590_v62 = vpack.c.bf16 %v6328_v44, %v6327_v60  ;;  %v4606_v60 = vld [vmem:[#allocation5 + $0x1b0] sm:$0xff]  ;;  %3081 = vmatprep.subr.bf16.mxu0 %v4475_v59  ;;  %3465 = vmatprep.subr.bf16.mxu1 %v4475_v59  ;;  %v4621_v44 = vld [vmem:[#allocation5 + $0x1c0] sm:$0xff]  ;;  %v4628_v63 = vand.u32 4294901760, %v213_v0  ;;  %v6341_v2 = vand.u32 4294901760, %v4616_v41 }
  0x7a   : > { %6325 = vst [vmem:[#allocation62_spill] sm:$0xff] %v4580_v6  ;;  %v4596_v23 = vpack.c.bf16 %v6331_v24, %v6330_v17  ;;  %6333 = vst [vmem:[#allocation66_spill] sm:$0xff] %v4606_v60  ;;  %v4610_v17 = vld [vmem:[#allocation5 + $0x1d8] sm:$0xff]  ;;  %v6334_v24 = vand.u32 4294901760, %v4542_v11  ;;  %v4623_v10 = vld [vmem:[#allocation5 + $0x1d0] sm:$0xff]  ;;  %v6344_v47 = vand.u32 4294901760, %v4257_v5 }
  0x7b   : > { %6329 = vst [vmem:[#allocation64_spill] sm:$0xff] %v4590_v62  ;;  %6335 = vst [vmem:[#allocation67_spill] sm:$0xff] %v4616_v41  ;;  %v4625_v32 = vld [vmem:[#allocation5 + $0x1e8] sm:$0xff]  ;;  %v1696_v30 = vsub.f32 %v4616_v41, %v6341_v2  ;;  %v4654_v55 = vld [vmem:[#allocation5 + $0x1e0] sm:$0xff]  ;;  %v6347_v2 = vand.u32 4294901760, %v4566_v3  ;;  %v6348_v54 = vand.u32 4294901760, %v4580_v6 }
  0x7c   : > { %6332 = vst [vmem:[#allocation65_spill] sm:$0xff] %v4596_v23  ;;  %v410_v1 = vsub.f32 %v4542_v11, %v6334_v24  ;;  %6336 = vst [vmem:[#allocation68_spill] sm:$0xff] %v4623_v10  ;;  %v1563_v24 = vmul.f32 %v213_v0, %v213_v0  ;;  %v4630_v11 = vld [vmem:[#allocation5 + $0x1f8] sm:$0xff]  ;;  %3083 = vmatpush1.bf16.msra.mxu0 %v4489_v31  ;;  %3467 = vmatpush1.bf16.msra.mxu1 %v4489_v31 }
  0x7d   : > { %6337 = vst [vmem:[#allocation69_spill] sm:$0xff] %v4625_v32  ;;  %6338 = vst [vmem:[#allocation70_spill] sm:$0xff] %v4628_v63  ;;  %3085 = vmatprep.subr.bf16.mxu0 %v4495_v43  ;;  %3469 = vmatprep.subr.bf16.mxu1 %v4495_v43  ;;  %v4664_v59 = vsub.f32 %v4257_v5, %v6344_v47  ;;  %v427_v43 = vsub.f32 %v4566_v3, %v6347_v2  ;;  %v1697_v41 = vand.u32 4294901760, %v1696_v30 }
  0x7e   : > { %v411_v29 = vand.u32 4294901760, %v410_v1  ;;  %6340 = vst [vmem:[#allocation71_spill] sm:$0xff] %v4637_v58  ;;  %6342 = vst [vmem:[#allocation72_spill] sm:$0xff] %v4656_v56  ;;  %v4659_v1 = vsub.f32 %v213_v0, %v4628_v63  ;;  %v4666_v57 = vand.u32 4294901760, %v1563_v24  ;;  %v439_v31 = vsub.f32 %v4580_v6, %v6348_v54 }
  0x7f   : > { %6345 = vst [vmem:[#allocation74_spill] sm:$0xff] %v4664_v59  ;;  %v6349_v63 = vand.u32 4294901760, %v4521_v40  ;;  %v6352_v47 = vand.u32 4294901760, %v4539_v16  ;;  %v6355_v2 = vand.u32 4294901760, %v4561_v39  ;;  %v6356_v3 = vand.u32 4294901760, %v4574_v19  ;;  %1698 = vmatprep.mubr.f32.mxu1 %v1697_v41 }
  0x80   : > { %6343 = vst [vmem:[#allocation73_spill] sm:$0xff] %v4659_v1  ;;  %6346 = vst [vmem:[#allocation75_spill] sm:$0xff] %v4666_v57  ;;  %412 = vmatprep.mubr.f32.mxu0 %v411_v29  ;;  %v6353_v29 = vand.u32 4294901760, %v4559_v28  ;;  %v6358_v30 = vand.u32 4294901760, %v4600_v42  ;;  %v6359_v0 = vand.u32 4294901760, %v4606_v60  ;;  %3087 = vmatpush1.bf16.msra.mxu0 %v4517_v22  ;;  %v440_v60 = vand.u32 4294901760, %v439_v31 }
  0x81   : > { %v4679_v5 = vpack.c.bf16 %v6350_v53, %v6349_v63  ;;  %v4691_v54 = vpack.c.bf16 %v6356_v3, %v6355_v2  ;;  %3471 = vmatpush1.bf16.msra.mxu1 %v4517_v22  ;;  %v6361_v53 = vand.u32 4294901760, %v4608_v27  ;;  %v6362_v63 = vand.u32 4294901760, %v4610_v17  ;;  %3089 = vmatprep.subr.bf16.mxu0 %v4535_v9 }
  0x82   : > { %v4685_v52 = vpack.c.bf16 %v6353_v29, %v6352_v47  ;;  %v4697_v6 = vpack.c.bf16 %v6359_v0, %v6358_v30  ;;  %v6364_v29 = vand.u32 4294901760, %v4621_v44  ;;  %v6365_v3 = vand.u32 4294901760, %v4623_v10  ;;  %3473 = vmatprep.subr.bf16.mxu1 %v4535_v9 }
  0x83   : > { %6351 = vst [vmem:[#allocation76_spill] sm:$0xff] %v4679_v5  ;;  %6357 = vst [vmem:[#allocation78_spill] sm:$0xff] %v4691_v54  ;;  %v4705_v47 = vpack.c.bf16 %v6362_v63, %v6361_v53  ;;  %v6367_v30 = vand.u32 4294901760, %v4625_v32  ;;  %v6368_v22 = vand.u32 4294901760, %v4630_v11  ;;  %v4725_v10 = vsub.f32 %v1563_v24, %v4666_v57 }
  0x84   : > { %6354 = vst [vmem:[#allocation77_spill] sm:$0xff] %v4685_v52  ;;  %6360 = vst [vmem:[#allocation79_spill] sm:$0xff] %v4697_v6  ;;  %v4711_v2 = vpack.c.bf16 %v6365_v3, %v6364_v29  ;;  %v6371_v29 = vand.u32 4294901760, %v4260_v7  ;;  %v428_v0 = vand.u32 4294901760, %v427_v43  ;;  %v6125_v9 = vand.u32 4294901760, %v4659_v1  ;;  %3091 = vmatpush1.bf16.msra.mxu0 %v4550_v61 }
  0x85   : > { %6363 = vst [vmem:[#allocation80_spill] sm:$0xff] %v4705_v47  ;;  %v4721_v53 = vpack.c.bf16 %v6368_v22, %v6367_v30  ;;  %6370 = vst [vmem:[#allocation83_spill] sm:$0xff] %v4725_v10  ;;  %v6373_v32 = vand.u32 4294901760, %v4637_v58  ;;  %v6374_v30 = vand.u32 4294901760, %v4262_v8  ;;  %v6376_v63 = vand.u32 4294901760, %v4267_v12  ;;  %3475 = vmatpush1.bf16.msra.mxu1 %v4550_v61  ;;  %3093 = vmatprep.subr.bf16.mxu0 %v4556_v4 }
  0x86   : > { %6366 = vst [vmem:[#allocation81_spill] sm:$0xff] %v4711_v2  ;;  %v4730_v3 = vsub.f32 %v4260_v7, %v6371_v29  ;;  %v6377_v31 = vand.u32 4294901760, %v4269_v13  ;;  %v6378_v43 = vand.u32 4294901760, %v4271_v14  ;;  %3477 = vmatprep.subr.bf16.mxu1 %v4556_v4  ;;  %v6388_v4 = vand.u32 4294901760, %v4664_v59 }
  0x87   : > { %6369 = vst [vmem:[#allocation82_spill] sm:$0xff] %v4721_v53  ;;  %v4736_v22 = vsub.f32 %v4637_v58, %v6373_v32  ;;  %v4741_v24 = vsub.f32 %v4262_v8, %v6374_v30  ;;  %v4746_v7 = vsub.f32 %v4267_v12, %v6376_v63  ;;  %v6380_v8 = vand.u32 4294901760, %v4281_v18 }
  0x88   : > { %6372 = vst [vmem:[#allocation84_spill] sm:$0xff] %v4730_v3  ;;  %v4751_v41 = vsub.f32 %v4269_v13, %v6377_v31  ;;  %v4756_v32 = vsub.f32 %v4271_v14, %v6378_v43  ;;  %v6382_v12 = vand.u32 4294901760, %v4284_v20  ;;  %v6383_v13 = vand.u32 4294901760, %v4286_v21  ;;  %3095 = vmatpush1.bf16.msra.mxu0 %v4572_v48 }
  0x89   : > { %6375 = vst [vmem:[#allocation85_spill] sm:$0xff] %v4741_v24  ;;  %v4763_v29 = vsub.f32 %v4281_v18, %v6380_v8  ;;  %v6384_v14 = vand.u32 4294901760, %v4654_v55  ;;  %v6385_v31 = vand.u32 4294901760, %v4656_v56  ;;  %v6387_v8 = vand.u32 4294901760, %v4301_v25  ;;  %3479 = vmatpush1.bf16.msra.mxu1 %v4572_v48  ;;  %3097 = vmatprep.subr.bf16.mxu0 %v4590_v62 }
  0x8a   : > { %6379 = vst [vmem:[#allocation86_spill] sm:$0xff] %v4756_v32  ;;  %v4768_v63 = vsub.f32 %v4284_v20, %v6382_v12  ;;  %v4773_v30 = vsub.f32 %v4286_v21, %v6383_v13  ;;  %v4790_v21 = vpack.c.bf16 %v440_v60, %v428_v0  ;;  %v4795_v13 = vsub.f32 %v4659_v1, %v6125_v9 }
  0x8b   : > { %6381 = vst [vmem:[#allocation87_spill] sm:$0xff] %v4763_v29  ;;  %v4781_v18 = vpack.c.bf16 %v6385_v31, %v6384_v14  ;;  %v4788_v12 = vsub.f32 %v4301_v25, %v6387_v8  ;;  %v4800_v14 = vsub.f32 %v4664_v59, %v6388_v4  ;;  %v6389_v31 = vand.u32 4294901760, %v4303_v26  ;;  %3481 = vmatprep.subr.bf16.mxu1 %v4590_v62 }
  0x8c   : > { %v434_v4 = vand.u32 4294901760, %v4736_v22  ;;  %v6391_v0 = vand.u32 4294901760, %v4730_v3  ;;  %v6392_v9 = vand.u32 4294901760, %v4327_v33  ;;  %v6394_v25 = vand.u32 4294901760, %v4329_v34  ;;  %3099 = vmatpush1.bf16.msra.mxu0 %v4596_v23 }
  0x8d   : > { %6386 = vst [vmem:[#allocation88_spill] sm:$0xff] %v4781_v18  ;;  %v4805_v20 = vsub.f32 %v4303_v26, %v6389_v31  ;;  %v6390_v31 = vand.u32 4294901760, %v4725_v10  ;;  %v6401_v26 = vand.u32 4294901760, %v4746_v7  ;;  %3483 = vmatpush1.bf16.msra.mxu1 %v4596_v23  ;;  %3101 = vmatprep.subr.bf16.mxu0 %v4679_v5 }
  0x8e   : > { %v451_v60 = vsub.f32 %v4730_v3, %v6391_v0  ;;  %v4831_v43 = vsub.f32 %v4327_v33, %v6392_v9  ;;  %v4837_v62 = vsub.f32 %v4329_v34, %v6394_v25  ;;  %v6398_v0 = vand.u32 4294901760, %v4333_v36  ;;  %3485 = vmatprep.subr.bf16.mxu1 %v4679_v5 }
  0x8f   : > { %v4822_v8 = vsub.f32 %v4725_v10, %v6390_v31  ;;  %v6396_v31 = vand.u32 4294901760, %v4331_v35  ;;  %v6400_v9 = vand.u32 4294901760, %v4741_v24  ;;  %v457_v61 = vsub.f32 %v4746_v7, %v6401_v26 }
  0x90   : > { %6393 = vst [vmem:[#allocation89_spill] sm:$0xff] %v4831_v43  ;;  %6395 = vst [vmem:[#allocation90_spill] sm:$0xff] %v4837_v62  ;;  %v4847_v22 = vsub.f32 %v4333_v36, %v6398_v0  ;;  %v6402_v34 = vand.u32 4294901760, %v4751_v41  ;;  %v446_v36 = vand.u32 4294901760, %v4800_v14  ;;  %v6404_v0 = vand.u32 4294901760, %v4763_v29  ;;  %3103 = vmatpush1.bf16.msra.mxu0 %v4685_v52 }
  0x91   : > { %v4842_v48 = vsub.f32 %v4331_v35, %v6396_v31  ;;  %v463_v33 = vsub.f32 %v4741_v24, %v6400_v9  ;;  %v6403_v35 = vand.u32 4294901760, %v4756_v32  ;;  %v6405_v26 = vand.u32 4294901760, %v4768_v63  ;;  %3487 = vmatpush1.bf16.msra.mxu1 %v4685_v52  ;;  %3105 = vmatprep.subr.bf16.mxu0 %v4691_v54  ;;  %v6470_v52 = vld [vmem:[#allocation34_spill] sm:$0xff] }
  0x92   : > { %6399 = vst [vmem:[#allocation92_spill] sm:$0xff] %v4847_v22  ;;  %v469_v25 = vsub.f32 %v4751_v41, %v6402_v34  ;;  %v487_v9 = vsub.f32 %v4763_v29, %v6404_v0  ;;  %v6406_v34 = vand.u32 4294901760, %v4773_v30  ;;  %v6408_v0 = vand.u32 4294901760, %v4335_v37  ;;  %3489 = vmatprep.subr.bf16.mxu1 %v4691_v54 }
  0x93   : > { %6397 = vst [vmem:[#allocation91_spill] sm:$0xff] %v4842_v48  ;;  %v475_v31 = vsub.f32 %v4756_v32, %v6403_v35  ;;  %v481_v10 = vsub.f32 %v4768_v63, %v6405_v26  ;;  %v6407_v35 = vand.u32 4294901760, %v4788_v12  ;;  %v6410_v26 = vand.u32 4294901760, %v4337_v38 }
  0x94   : > { %v493_v1 = vsub.f32 %v4773_v30, %v6406_v34  ;;  %v4882_v29 = vsub.f32 %v4335_v37, %v6408_v0  ;;  %v6412_v34 = vand.u32 4294901760, %v4805_v20  ;;  %v6154_v57 = vand.u32 4294901760, %v4837_v62  ;;  %3107 = vmatpush1.bf16.msra.mxu0 %v4697_v6 }
  0x95   : > { %v499_v14 = vsub.f32 %v4788_v12, %v6407_v35  ;;  %v4887_v32 = vsub.f32 %v4337_v38, %v6410_v26  ;;  %v6155_v23 = vand.u32 4294901760, %v4847_v22  ;;  %v452_v24 = vand.u32 4294901760, %v451_v60  ;;  %3491 = vmatpush1.bf16.msra.mxu1 %v4697_v6  ;;  %3109 = vmatprep.subr.bf16.mxu0 %v4705_v47 }
  0x96   : > { %6409 = vst [vmem:[#allocation93_spill] sm:$0xff] %v4882_v29  ;;  %v511_v5 = vsub.f32 %v4805_v20, %v6412_v34  ;;  %v464_v3 = vand.u32 4294901760, %v463_v33  ;;  %v458_v59 = vand.u32 4294901760, %v457_v61  ;;  %v470_v37 = vand.u32 4294901760, %v469_v25  ;;  %3493 = vmatprep.subr.bf16.mxu1 %v4705_v47 }
  0x97   : > { %6411 = vst [vmem:[#allocation94_spill] sm:$0xff] %v4887_v32  ;;  %v476_v38 = vand.u32 4294901760, %v475_v31  ;;  %v488_v0 = vand.u32 4294901760, %v487_v9  ;;  %v482_v26 = vand.u32 4294901760, %v481_v10  ;;  %v494_v58 = vand.u32 4294901760, %v493_v1 }
  0x98   : > { %v500_v34 = vand.u32 4294901760, %v499_v14  ;;  %v6413_v35 = vand.u32 4294901760, %v4831_v43  ;;  %v512_v25 = vand.u32 4294901760, %v511_v5  ;;  %v517_v31 = vsub.f32 %v4837_v62, %v6154_v57  ;;  %3111 = vmatpush1.bf16.msra.mxu0 %v4711_v2 }
  0x99   : > { %v6414_v10 = vand.u32 4294901760, %v4842_v48  ;;  %v535_v9 = vsub.f32 %v4847_v22, %v6155_v23  ;;  %v417_v14 = vand.u32 4294901760, %v4795_v13  ;;  %v4916_v61 = vpack.c.bf16 %v464_v3, %v452_v24  ;;  %3495 = vmatpush1.bf16.msra.mxu1 %v4711_v2  ;;  %3113 = vmatprep.subr.bf16.mxu0 %v4721_v53 }
  0x9a   : > { %v505_v60 = vsub.f32 %v4831_v43, %v6413_v35  ;;  %v4914_v35 = vpack.c.bf16 %v446_v36, %v434_v4  ;;  %v6415_v5 = vand.u32 4294901760, %v4359_v45  ;;  %v4926_v57 = vpack.c.bf16 %v470_v37, %v458_v59  ;;  %3497 = vmatprep.subr.bf16.mxu1 %v4721_v53 }
  0x9b   : > { %v523_v1 = vsub.f32 %v4842_v48, %v6414_v10  ;;  %v1703_v10 = vand.u32 4294901760, %v4822_v8  ;;  %v4928_v23 = vpack.c.bf16 %v488_v0, %v476_v38  ;;  %v6417_v13 = vand.u32 4294901760, %v4361_v46 }
  0x9c   : > { %v4921_v33 = vsub.f32 %v4359_v45, %v6415_v5  ;;  %v4937_v45 = vpack.c.bf16 %v494_v58, %v482_v26  ;;  %v506_v24 = vand.u32 4294901760, %v505_v60  ;;  %v6419_v4 = vand.u32 4294901760, %v4882_v29  ;;  %v6436_v5 = vld [vmem:[#allocation25_spill] sm:$0xff]  ;;  %3115 = vmatpush1.bf16.msra.mxu0 %v4781_v18 }
  0x9d   : > { %v4933_v3 = vsub.f32 %v4361_v46, %v6417_v13  ;;  %v6420_v59 = vand.u32 4294901760, %v4887_v32  ;;  %v4945_v37 = vpack.c.bf16 %v512_v25, %v500_v34  ;;  %v518_v38 = vand.u32 4294901760, %v517_v31  ;;  %v6427_v31 = vld [vmem:[#allocation21_spill] sm:$0xff]  ;;  %3499 = vmatpush1.bf16.msra.mxu1 %v4781_v18  ;;  %3117 = vmatprep.subr.bf16.mxu0 %v4790_v21 }
  0x9e   : > { %6416 = vst [vmem:[#allocation95_spill] sm:$0xff] %v4921_v33  ;;  %v529_v8 = vsub.f32 %v4882_v29, %v6419_v4  ;;  %v524_v46 = vand.u32 4294901760, %v523_v1  ;;  %v536_v0 = vand.u32 4294901760, %v535_v9  ;;  %v6421_v13 = vand.u32 4294901760, %v4365_v49  ;;  %v6430_v9 = vld [vmem:[#allocation22_spill] sm:$0xff]  ;;  %3501 = vmatprep.subr.bf16.mxu1 %v4790_v21  ;;  %v6456_v21 = vld [vmem:[#allocation33_spill] sm:$0xff] }
  0x9f   : > { %6418 = vst [vmem:[#allocation96_spill] sm:$0xff] %v4933_v3  ;;  %v541_v36 = vsub.f32 %v4887_v32, %v6420_v59  ;;  %v6423_v26 = vand.u32 4294901760, %v4367_v50  ;;  %v6425_v4 = vand.u32 4294901760, %v4369_v51  ;;  %v6428_v1 = vand.u32 4294901760, %v6427_v31  ;;  %418 = vmatmul.mubr.f32.vlgmr.msra.gmra.mrb[0].mxu0 %v417_v14 }
  0xa0   : > { %v4951_v58 = vsub.f32 %v4365_v49, %v6421_v13  ;;  %v6431_v59 = vand.u32 4294901760, %v6430_v9  ;;  %v6433_v13 = vld [vmem:[#allocation23_spill] sm:$0xff]  ;;  %v6437_v2 = vand.u32 4294901760, %v6436_v5  ;;  %1704 = vmatmul.mubr.f32.vlgmr.msra.gmra.mrb[0].mxu1 %v1703_v10  ;;  %3119 = vmatpush1.bf16.msra.mxu0 %v4914_v35 }
  0xa1   : > { %v4956_v60 = vsub.f32 %v4367_v50, %v6423_v26  ;;  %v4961_v34 = vsub.f32 %v4369_v51, %v6425_v4  ;;  %v4969_v49 = vsub.f32 %v6427_v31, %v6428_v1  ;;  %v6434_v26 = vand.u32 4294901760, %v6433_v13  ;;  %v6439_v1 = vld [vmem:[#allocation26_spill] sm:$0xff]  ;;  %3503 = vmatpush1.bf16.msra.mxu1 %v4914_v35  ;;  %3121 = vmatprep.subr.bf16.mxu0 %v4916_v61 }
  0xa2   : > { %6422 = vst [vmem:[#allocation97_spill] sm:$0xff] %v4951_v58  ;;  %v4974_v50 = vsub.f32 %v6430_v9, %v6431_v59  ;;  %v530_v4 = vand.u32 4294901760, %v529_v8  ;;  %v542_v25 = vand.u32 4294901760, %v541_v36  ;;  %v4986_v31 = vsub.f32 %v6436_v5, %v6437_v2  ;;  %v6445_v8 = vld [vmem:[#allocation29_spill] sm:$0xff]  ;;  %3505 = vmatprep.subr.bf16.mxu1 %v4916_v61 }
  0xa3   : > { %6424 = vst [vmem:[#allocation98_spill] sm:$0xff] %v4956_v60  ;;  %6426 = vst [vmem:[#allocation99_spill] sm:$0xff] %v4961_v34  ;;  %v4979_v51 = vsub.f32 %v6433_v13, %v6434_v26  ;;  %v6440_v47 = vand.u32 4294901760, %v6439_v1  ;;  %v4993_v59 = vpack.c.bf16 %v518_v38, %v506_v24  ;;  %v4995_v13 = vpack.c.bf16 %v536_v0, %v524_v46  ;;  %v6442_v26 = vld [vmem:[#allocation27_spill] sm:$0xff]  ;;  %v6450_v38 = vld [vmem:[#allocation30_spill] sm:$0xff] }
  0xa4   : > { %6429 = vst [vmem:[#allocation21_spill] sm:$0xff] %v4969_v49  ;;  %6432 = vst [vmem:[#allocation22_spill] sm:$0xff] %v4974_v50  ;;  %v6443_v6 = vand.u32 4294901760, %v6442_v26  ;;  %v6446_v36 = vand.u32 4294901760, %v6445_v8  ;;  %v6448_v2 = vand.u32 4294901760, %v4921_v33  ;;  %v6451_v24 = vand.u32 4294901760, %v6450_v38  ;;  %3123 = vmatpush1.bf16.msra.mxu0 %v4926_v57 }
  0xa5   : > { %6435 = vst [vmem:[#allocation23_spill] sm:$0xff] %v4979_v51  ;;  %6438 = vst [vmem:[#allocation25_spill] sm:$0xff] %v4986_v31  ;;  %v4991_v9 = vsub.f32 %v6439_v1, %v6440_v47  ;;  %v6461_v0 = vand.u32 4294901760, %v4961_v34  ;;  %v6462_v14 = vand.u32 4294901760, %v4969_v49  ;;  %3507 = vmatpush1.bf16.msra.mxu1 %v4926_v57  ;;  %3125 = vmatprep.subr.bf16.mxu0 %v4928_v23 }
  0xa6   : > { %v5000_v53 = vsub.f32 %v6442_v26, %v6443_v6  ;;  %v5005_v54 = vsub.f32 %v6445_v8, %v6446_v36  ;;  %v5010_v5 = vsub.f32 %v4921_v33, %v6448_v2  ;;  %v6449_v6 = vand.u32 4294901760, %v4933_v3  ;;  %v6453_v26 = vld [vmem:[#allocation31_spill] sm:$0xff]  ;;  %3509 = vmatprep.subr.bf16.mxu1 %v4928_v23 }
  0xa7   : > { %6441 = vst [vmem:[#allocation26_spill] sm:$0xff] %v4991_v9  ;;  %v5025_v8 = vpack.c.bf16 %v542_v25, %v530_v4  ;;  %v6176_v36 = vand.u32 4294901760, %v4986_v31  ;;  %v6454_v47 = vand.u32 4294901760, %v6453_v26  ;;  %v6457_v25 = vand.u32 4294901760, %v6456_v21 }
  0xa8   : > { %6444 = vst [vmem:[#allocation27_spill] sm:$0xff] %v5000_v53  ;;  %6447 = vst [vmem:[#allocation29_spill] sm:$0xff] %v5005_v54  ;;  %v559_v46 = vsub.f32 %v4933_v3, %v6449_v6  ;;  %v5032_v6 = vsub.f32 %v6450_v38, %v6451_v24  ;;  %v6459_v2 = vand.u32 4294901760, %v4951_v58  ;;  %v6460_v38 = vand.u32 4294901760, %v4956_v60  ;;  %3127 = vmatpush1.bf16.msra.mxu0 %v4937_v45 }
  0xa9   : > { %v5039_v18 = vsub.f32 %v6453_v26, %v6454_v47  ;;  %v5044_v4 = vsub.f32 %v6456_v21, %v6457_v25  ;;  %v571_v47 = vsub.f32 %v4961_v34, %v6461_v0  ;;  %v548_v26 = vand.u32 4294901760, %v5010_v5  ;;  %3511 = vmatpush1.bf16.msra.mxu1 %v4937_v45  ;;  %3129 = vmatprep.subr.bf16.mxu0 %v4945_v37 }
  0xaa   : > { %6452 = vst [vmem:[#allocation30_spill] sm:$0xff] %v5032_v6  ;;  %v553_v24 = vsub.f32 %v4951_v58, %v6459_v2  ;;  %v565_v1 = vsub.f32 %v4956_v60, %v6460_v38  ;;  %v583_v10 = vsub.f32 %v4969_v49, %v6462_v14  ;;  %v6463_v2 = vand.u32 4294901760, %v4974_v50  ;;  %v6468_v49 = vld [vmem:[#allocation55_spill] sm:$0xff]  ;;  %3513 = vmatprep.subr.bf16.mxu1 %v4945_v37 }
  0xab   : > { %6455 = vst [vmem:[#allocation31_spill] sm:$0xff] %v5039_v18  ;;  %6458 = vst [vmem:[#allocation33_spill] sm:$0xff] %v5044_v4  ;;  %v6464_v25 = vand.u32 4294901760, %v4979_v51  ;;  %v560_v0 = vand.u32 4294901760, %v559_v46  ;;  %v595_v35 = vsub.f32 %v4986_v31, %v6176_v36  ;;  %v6465_v5 = vand.u32 4294901760, %v4991_v9  ;;  %809 = vmatprep.mubr.f32.mxu0 %v6468_v49  ;;  %v6469_v36 = vld [vmem:[#allocation63_spill] sm:$0xff] }
  0xac   : > { %v577_v21 = vsub.f32 %v4974_v50, %v6463_v2  ;;  %v6466_v2 = vand.u32 4294901760, %v5000_v53  ;;  %2095 = vmatprep.mubr.f32.mxu1 %v6469_v36  ;;  %v554_v31 = vand.u32 4294901760, %v553_v24  ;;  %v6471_v34 = vand.u32 4294901760, %v6470_v52  ;;  %v6473_v46 = vld [vmem:[#allocation36_spill] sm:$0xff]  ;;  %3131 = vmatpush1.bf16.msra.mxu0 %v4993_v59 }
  0xad   : > { %v589_v38 = vsub.f32 %v4979_v51, %v6464_v25  ;;  %v607_v14 = vsub.f32 %v4991_v9, %v6465_v5  ;;  %v6467_v25 = vand.u32 4294901760, %v5005_v54  ;;  %v566_v5 = vand.u32 4294901760, %v565_v1  ;;  %3515 = vmatpush1.bf16.msra.mxu1 %v4993_v59  ;;  %3133 = vmatprep.subr.bf16.mxu0 %v4995_v13 }
  0xae   : > { %v601_v50 = vsub.f32 %v5000_v53, %v6466_v2  ;;  %v572_v9 = vand.u32 4294901760, %v571_v47  ;;  %v5089_v56 = vsub.f32 %v6470_v52, %v6471_v34  ;;  %v584_v2 = vand.u32 4294901760, %v583_v10  ;;  %v6477_v47 = vld [vmem:[#allocation37_spill] sm:$0xff]  ;;  %3517 = vmatprep.subr.bf16.mxu1 %v4995_v13 }
  0xaf   : > { %v613_v51 = vsub.f32 %v5005_v54, %v6467_v25  ;;  %v578_v25 = vand.u32 4294901760, %v577_v21  ;;  %v590_v61 = vand.u32 4294901760, %v589_v38  ;;  %v6474_v54 = vand.u32 4294901760, %v6473_v46  ;;  %v6508_v13 = vld [vmem:[#allocation53_spill] sm:$0xff] }
  0xb0   : > { %6472 = vst [vmem:[#allocation34_spill] sm:$0xff] %v5089_v56  ;;  %v596_v1 = vand.u32 4294901760, %v595_v35  ;;  %v608_v24 = vand.u32 4294901760, %v607_v14  ;;  %v6476_v52 = vand.u32 4294901760, %v5032_v6  ;;  %v6478_v57 = vand.u32 4294901760, %v6477_v47  ;;  %3135 = vmatpush1.bf16.msra.mxu0 %v5025_v8 }
  0xb1   : > { %v5096_v49 = vsub.f32 %v6473_v46, %v6474_v54  ;;  %v602_v21 = vand.u32 4294901760, %v601_v50  ;;  %v614_v38 = vand.u32 4294901760, %v613_v51  ;;  %v6480_v54 = vand.u32 4294901760, %v5039_v18  ;;  %3519 = vmatpush1.bf16.msra.mxu1 %v5025_v8 }
  0xb2   : > { %v619_v34 = vsub.f32 %v5032_v6, %v6476_v52  ;;  %v5106_v10 = vsub.f32 %v6477_v47, %v6478_v57  ;;  %v6481_v36 = vand.u32 4294901760, %v5044_v4  ;;  %v3136_v35 = vpack.c.bf16 %v560_v0, %v548_v26  ;;  %v6482_v6 = vld [vmem:[#allocation38_spill] sm:$0xff]  ;;  %v6487_v26 = vld [vmem:[#allocation40_spill] sm:$0xff] }
  0xb3   : > { %6475 = vst [vmem:[#allocation36_spill] sm:$0xff] %v5096_v49  ;;  %v631_v46 = vsub.f32 %v5039_v18, %v6480_v54  ;;  %v5116_v14 = vpack.c.bf16 %v566_v5, %v554_v31  ;;  %v6191_v52 = vand.u32 4294901760, %v5089_v56  ;;  %v6483_v53 = vand.u32 4294901760, %v6482_v6 }
  0xb4   : > { %6479 = vst [vmem:[#allocation37_spill] sm:$0xff] %v5106_v10  ;;  %v5114_v23 = vsub.f32 %v5044_v4, %v6481_v36  ;;  %v5126_v50 = vpack.c.bf16 %v584_v2, %v572_v9  ;;  %v6192_v51 = vand.u32 4294901760, %v5096_v49  ;;  %v6484_v36 = vld [vmem:[#allocation39_spill] sm:$0xff]  ;;  %v6488_v0 = vand.u32 4294901760, %v6487_v26  ;;  %3137 = vmatprep.subr.bf16.mxu0 %v3136_v35  ;;  %3521 = vmatprep.subr.bf16.mxu1 %v3136_v35 }
  0xb5   : > { %v5122_v47 = vsub.f32 %v6482_v6, %v6483_v53  ;;  %v6485_v57 = vand.u32 4294901760, %v6484_v36  ;;  %v5141_v53 = vpack.c.bf16 %v590_v61, %v578_v25  ;;  %v5143_v45 = vpack.c.bf16 %v608_v24, %v596_v1  ;;  %v6490_v6 = vld [vmem:[#allocation41_spill] sm:$0xff]  ;;  %v6493_v25 = vld [vmem:[#allocation46_spill] sm:$0xff]  ;;  %3139 = vmatpush1.bf16.msra.mxu0 %v5116_v14  ;;  %3523 = vmatpush1.bf16.msra.mxu1 %v5116_v14 }
  0xb6   : > { %v5137_v5 = vsub.f32 %v6487_v26, %v6488_v0  ;;  %v6195_v9 = vand.u32 4294901760, %v5106_v10  ;;  %v6491_v2 = vand.u32 4294901760, %v6490_v6  ;;  %v632_v26 = vand.u32 4294901760, %v631_v46  ;;  %v6505_v46 = vld [vmem:[#allocation52_spill] sm:$0xff]  ;;  %3141 = vmatprep.subr.bf16.mxu0 %v5126_v50  ;;  %3525 = vmatprep.subr.bf16.mxu1 %v5126_v50 }
  0xb7   : > { %v5132_v31 = vsub.f32 %v6484_v36, %v6485_v57  ;;  %v5151_v36 = vpack.c.bf16 %v614_v38, %v602_v21  ;;  %v620_v57 = vand.u32 4294901760, %v619_v34  ;;  %v5157_v37 = vsub.f32 %v5089_v56, %v6191_v52 }
  0xb8   : > { %6489 = vst [vmem:[#allocation39_spill] sm:$0xff] %v5137_v5  ;;  %v5149_v54 = vsub.f32 %v6490_v6, %v6491_v2  ;;  %v6494_v1 = vand.u32 4294901760, %v6493_v25  ;;  %v6496_v6 = vld [vmem:[#allocation47_spill] sm:$0xff]  ;;  %v5175_v34 = vsub.f32 %v5096_v49, %v6192_v51  ;;  %v5189_v59 = vsub.f32 %v5106_v10, %v6195_v9 }
  0xb9   : > { %6486 = vst [vmem:[#allocation38_spill] sm:$0xff] %v5132_v31  ;;  %v6497_v2 = vand.u32 4294901760, %v6496_v6  ;;  %v6506_v38 = vand.u32 4294901760, %v6505_v46  ;;  %v6509_v61 = vand.u32 4294901760, %v6508_v13  ;;  %v6511_v9 = vand.u32 4294901760, %v4521_v40  ;;  %3143 = vmatpush1.bf16.msra.mxu0 %v5141_v53  ;;  %3527 = vmatpush1.bf16.msra.mxu1 %v5141_v53 }
  0xba   : > { %6492 = vst [vmem:[#allocation40_spill] sm:$0xff] %v5149_v54  ;;  %v5163_v24 = vsub.f32 %v6493_v25, %v6494_v1  ;;  %v6499_v25 = vld [vmem:[#allocation48_spill] sm:$0xff]  ;;  %3145 = vmatprep.subr.bf16.mxu0 %v5143_v45  ;;  %3529 = vmatprep.subr.bf16.mxu1 %v5143_v45 }
  0xbb   : > { %v5168_v21 = vsub.f32 %v6496_v6, %v6497_v2  ;;  %v6500_v1 = vand.u32 4294901760, %v6499_v25  ;;  %v6502_v2 = vld [vmem:[#allocation51_spill] sm:$0xff]  ;;  %v5207_v49 = vsub.f32 %v6508_v13, %v6509_v61  ;;  %v5212_v6 = vsub.f32 %v4521_v40, %v6511_v9 }
  0xbc   : > { %6495 = vst [vmem:[#allocation41_spill] sm:$0xff] %v5163_v24  ;;  %v6503_v51 = vand.u32 4294901760, %v6502_v2  ;;  %v644_v40 = vand.u32 4294901760, %v5175_v34 }
  0xbd   : > { %6498 = vst [vmem:[#allocation46_spill] sm:$0xff] %v5168_v21  ;;  %v5182_v52 = vsub.f32 %v6499_v25, %v6500_v1  ;;  %v5200_v25 = vsub.f32 %v6505_v46, %v6506_v38  ;;  %v5202_v1 = vpack.c.bf16 %v632_v26, %v620_v57  ;;  %6510 = vst [vmem:[#allocation52_spill] sm:$0xff] %v5207_v49  ;;  %v638_v38 = vand.u32 4294901760, %v5157_v37 }
  0xbe   : > { %v5195_v0 = vsub.f32 %v6502_v2, %v6503_v51  ;;  %6512 = vst [vmem:[#allocation53_spill] sm:$0xff] %v5212_v6  ;;  %v6513_v51 = vand.u32 4294901760, %v4537_v15  ;;  %v6515_v57 = vand.u32 4294901760, %v5122_v47  ;;  %v6517_v37 = vand.u32 4294901760, %v5137_v5  ;;  %3147 = vmatpush1.bf16.msra.mxu0 %v5151_v36  ;;  %3531 = vmatpush1.bf16.msra.mxu1 %v5151_v36 }
  0xbf   : > { %6501 = vst [vmem:[#allocation47_spill] sm:$0xff] %v5182_v52  ;;  %6507 = vst [vmem:[#allocation51_spill] sm:$0xff] %v5200_v25  ;;  %v6518_v46 = vand.u32 4294901760, %v5149_v54  ;;  %v6522_v34 = vand.u32 4294901760, %v5168_v21  ;;  %v6533_v50 = vand.u32 4294901760, %v5212_v6  ;;  %3149 = vmatprep.subr.bf16.mxu0 %v5202_v1  ;;  %3533 = vmatprep.subr.bf16.mxu1 %v5202_v1  ;;  %v6549_v1 = vand.u32 4294901760, %v4621_v44 }
  0xc0   : > { %6504 = vst [vmem:[#allocation48_spill] sm:$0xff] %v5195_v0  ;;  %v5217_v2 = vsub.f32 %v4537_v15, %v6513_v51  ;;  %v5223_v26 = vsub.f32 %v5122_v47, %v6515_v57  ;;  %v6516_v15 = vand.u32 4294901760, %v5132_v31  ;;  %v5236_v13 = vsub.f32 %v5137_v5, %v6517_v37 }
  0xc1   : > { %v656_v57 = vand.u32 4294901760, %v5189_v59  ;;  %v679_v8 = vsub.f32 %v5149_v54, %v6518_v46  ;;  %v6519_v51 = vand.u32 4294901760, %v4539_v16  ;;  %v6521_v5 = vand.u32 4294901760, %v5163_v24 }
  0xc2   : > { %6514 = vst [vmem:[#allocation100_spill] sm:$0xff] %v5217_v2  ;;  %v661_v9 = vsub.f32 %v5132_v31, %v6516_v15  ;;  %v650_v59 = vand.u32 4294901760, %v5223_v26  ;;  %v685_v61 = vsub.f32 %v5168_v21, %v6522_v34  ;;  %v6523_v15 = vand.u32 4294901760, %v4559_v28 }
  0xc3   : > { %v5251_v35 = vsub.f32 %v4539_v16, %v6519_v51  ;;  %v673_v46 = vsub.f32 %v5163_v24, %v6521_v5  ;;  %v668_v26 = vand.u32 4294901760, %v5236_v13  ;;  %v6525_v51 = vand.u32 4294901760, %v5182_v52 }
  0xc4   : > { %v5263_v31 = vsub.f32 %v4559_v28, %v6523_v15  ;;  %v662_v16 = vand.u32 4294901760, %v661_v9  ;;  %v6526_v37 = vand.u32 4294901760, %v4561_v39  ;;  %v680_v28 = vand.u32 4294901760, %v679_v8 }
  0xc5   : > { %6520 = vst [vmem:[#allocation101_spill] sm:$0xff] %v5251_v35  ;;  %v691_v5 = vsub.f32 %v5182_v52, %v6525_v51  ;;  %v6528_v15 = vand.u32 4294901760, %v5195_v0  ;;  %v6529_v9 = vand.u32 4294901760, %v5200_v25  ;;  %v6530_v51 = vand.u32 4294901760, %v4574_v19 }
  0xc6   : > { %6524 = vst [vmem:[#allocation102_spill] sm:$0xff] %v5263_v31  ;;  %v5274_v34 = vsub.f32 %v4561_v39, %v6526_v37  ;;  %v6532_v39 = vand.u32 4294901760, %v5207_v49  ;;  %v715_v8 = vsub.f32 %v5212_v6, %v6533_v50  ;;  %v6534_v21 = vand.u32 4294901760, %v5217_v2  ;;  %v6537_v6 = vld [vmem:[#allocation66_spill] sm:$0xff] }
  0xc7   : > { %v703_v14 = vsub.f32 %v5195_v0, %v6528_v15  ;;  %v697_v13 = vsub.f32 %v5200_v25, %v6529_v9  ;;  %v5287_v52 = vsub.f32 %v4574_v19, %v6530_v51  ;;  %v674_v9 = vand.u32 4294901760, %v673_v46 }
  0xc8   : > { %6527 = vst [vmem:[#allocation103_spill] sm:$0xff] %v5274_v34  ;;  %v709_v37 = vsub.f32 %v5207_v49, %v6532_v39  ;;  %v727_v15 = vsub.f32 %v5217_v2, %v6534_v21  ;;  %v686_v25 = vand.u32 4294901760, %v685_v61  ;;  %v6535_v19 = vand.u32 4294901760, %v4600_v42 }
  0xc9   : > { %6531 = vst [vmem:[#allocation104_spill] sm:$0xff] %v5287_v52  ;;  %v692_v39 = vand.u32 4294901760, %v691_v5  ;;  %v6538_v21 = vand.u32 4294901760, %v6537_v6  ;;  %v6540_v61 = vand.u32 4294901760, %v4608_v27  ;;  %v6542_v5 = vand.u32 4294901760, %v4610_v17 }
  0xca   : > { %v5303_v51 = vsub.f32 %v4600_v42, %v6535_v19  ;;  %v704_v42 = vand.u32 4294901760, %v703_v14  ;;  %v698_v19 = vand.u32 4294901760, %v697_v13  ;;  %v728_v24 = vand.u32 4294901760, %v727_v15 }
  0xcb   : > { %v5311_v0 = vsub.f32 %v6537_v6, %v6538_v21  ;;  %v5316_v46 = vsub.f32 %v4608_v27, %v6540_v61  ;;  %v5324_v50 = vsub.f32 %v4610_v17, %v6542_v5  ;;  %v710_v6 = vand.u32 4294901760, %v709_v37 }
  0xcc   : > { %6536 = vst [vmem:[#allocation105_spill] sm:$0xff] %v5303_v51  ;;  %v716_v21 = vand.u32 4294901760, %v715_v8  ;;  %v6544_v2 = vand.u32 4294901760, %v5251_v35  ;;  %v6545_v61 = vand.u32 4294901760, %v5114_v23  ;;  %v3152_v14 = vpack.c.bf16 %v656_v57, %v644_v40 }
  0xcd   : > { %6539 = vst [vmem:[#allocation66_spill] sm:$0xff] %v5311_v0  ;;  %6541 = vst [vmem:[#allocation106_spill] sm:$0xff] %v5316_v46  ;;  %v6546_v13 = vand.u32 4294901760, %v5263_v31  ;;  %v6217_v17 = vand.u32 4294901760, %v5303_v51  ;;  %v3154_v37 = vpack.c.bf16 %v662_v16, %v650_v59  ;;  %v6547_v8 = vand.u32 4294901760, %v5274_v34 }
  0xce   : > { %6543 = vst [vmem:[#allocation107_spill] sm:$0xff] %v5324_v50  ;;  %v5329_v27 = vsub.f32 %v5251_v35, %v6544_v2  ;;  %v3150_v45 = vpack.c.bf16 %v638_v38, %v6545_v61  ;;  %v6216_v23 = vand.u32 4294901760, %v5311_v0  ;;  %v6215_v38 = vand.u32 4294901760, %v5316_v46 }
  0xcf   : > { %v5336_v53 = vsub.f32 %v5263_v31, %v6546_v13  ;;  %v5344_v2 = vsub.f32 %v5274_v34, %v6547_v8  ;;  %v3156_v40 = vpack.c.bf16 %v680_v28, %v668_v26  ;;  %v3158_v57 = vpack.c.bf16 %v686_v25, %v674_v9 }
  0xd0   : > { %v6548_v15 = vand.u32 4294901760, %v5287_v52  ;;  %v6214_v59 = vand.u32 4294901760, %v5324_v50  ;;  %v3160_v16 = vpack.c.bf16 %v704_v42, %v692_v39  ;;  %v5356_v5 = vpack.c.bf16 %v710_v6, %v698_v19  ;;  %3151 = vmatpush1.bf16.msra.mxu0 %v3150_v45  ;;  %3535 = vmatpush1.bf16.msra.mxu1 %v3150_v45  ;;  %v6553_v45 = vld [vmem:[#allocation69_spill] sm:$0xff] }
  0xd1   : > { %v5358_v61 = vpack.c.bf16 %v728_v24, %v716_v21  ;;  %v722_v13 = vand.u32 4294901760, %v5329_v27  ;;  %v734_v8 = vand.u32 4294901760, %v5336_v53  ;;  %v5365_v25 = vsub.f32 %v5303_v51, %v6217_v17  ;;  %3153 = vmatprep.subr.bf16.mxu0 %v3152_v14  ;;  %3537 = vmatprep.subr.bf16.mxu1 %v3152_v14  ;;  %v6561_v17 = vld [vmem:[#allocation21_spill] sm:$0xff] }
  0xd2   : > { %v5353_v36 = vsub.f32 %v5287_v52, %v6548_v15  ;;  %v5370_v26 = vsub.f32 %v4621_v44, %v6549_v1  ;;  %v5374_v28 = vpack.c.bf16 %v4751_v41, %v4746_v7  ;;  %v740_v24 = vand.u32 4294901760, %v5344_v2  ;;  %v6550_v44 = vld [vmem:[#allocation68_spill] sm:$0xff] }
  0xd3   : > { %v5380_v9 = vsub.f32 %v5311_v0, %v6216_v23  ;;  %v5385_v39 = vsub.f32 %v5316_v46, %v6215_v38  ;;  %v6551_v42 = vand.u32 4294901760, %v6550_v44  ;;  %v5396_v6 = vsub.f32 %v5324_v50, %v6214_v59  ;;  %v6558_v38 = vld [vmem:[#allocation72_spill] sm:$0xff] }
  0xd4   : > { %v752_v53 = vand.u32 4294901760, %v5353_v36  ;;  %v5400_v21 = vpack.c.bf16 %v4773_v30, %v4768_v63  ;;  %v5404_v27 = vpack.c.bf16 %v4805_v20, %v4788_v12  ;;  %v6554_v2 = vand.u32 4294901760, %v6553_v45  ;;  %3155 = vmatpush1.bf16.msra.mxu0 %v3154_v37  ;;  %3539 = vmatpush1.bf16.msra.mxu1 %v3154_v37  ;;  %v6564_v37 = vld [vmem:[#allocation25_spill] sm:$0xff] }
  0xd5   : > { %v5390_v19 = vsub.f32 %v6550_v44, %v6551_v42  ;;  %v6556_v14 = vand.u32 4294901760, %v4630_v11  ;;  %v5418_v1 = vpack.c.bf16 %v4837_v62, %v4831_v43  ;;  %v5422_v44 = vpack.c.bf16 %v4847_v22, %v4842_v48  ;;  %3157 = vmatprep.subr.bf16.mxu0 %v3156_v40  ;;  %3541 = vmatprep.subr.bf16.mxu1 %v3156_v40  ;;  %v6566_v22 = vld [vmem:[#allocation27_spill] sm:$0xff]  ;;  %v6567_v48 = vld [vmem:[#allocation29_spill] sm:$0xff]  ;;  %v6575_v62 = vld [vmem:[#allocation48_spill] sm:$0xff] }
  0xd6   : > { %v5409_v15 = vsub.f32 %v6553_v45, %v6554_v2  ;;  %v6557_v42 = vand.u32 4294901760, %v4654_v55  ;;  %v5431_v45 = vpack.c.bf16 %v4887_v32, %v4882_v29  ;;  %v5439_v2 = vpack.c.bf16 %v4956_v60, %v4951_v58  ;;  %v6562_v29 = vld [vmem:[#allocation22_spill] sm:$0xff]  ;;  %v6578_v43 = vld [vmem:[#allocation100_spill] sm:$0xff] }
  0xd7   : > { %6552 = vst [vmem:[#allocation68_spill] sm:$0xff] %v5390_v19  ;;  %v5414_v36 = vsub.f32 %v4630_v11, %v6556_v14  ;;  %v5435_v11 = vpack.c.bf16 %v4933_v3, %v4921_v33  ;;  %v6559_v23 = vand.u32 4294901760, %v6558_v38  ;;  %v6563_v3 = vld [vmem:[#allocation23_spill] sm:$0xff]  ;;  %v6565_v58 = vld [vmem:[#allocation26_spill] sm:$0xff] }
  0xd8   : > { %6555 = vst [vmem:[#allocation69_spill] sm:$0xff] %v5409_v15  ;;  %v5427_v59 = vsub.f32 %v4654_v55, %v6557_v42  ;;  %v6560_v42 = vld [vmem:[#allocation99_spill] sm:$0xff]  ;;  %v5453_v33 = vpack.c.bf16 %v6563_v3, %v6562_v29  ;;  %v5458_v14 = vpack.c.bf16 %v6565_v58, %v6564_v37  ;;  %v5470_v3 = vpack.c.bf16 %v5089_v56, %v5044_v4  ;;  %v6569_v29 = vld [vmem:[#allocation36_spill] sm:$0xff]  ;;  %v6570_v60 = vld [vmem:[#allocation38_spill] sm:$0xff] }
  0xd9   : > { %v5445_v55 = vsub.f32 %v6558_v38, %v6559_v23  ;;  %v5449_v32 = vpack.c.bf16 %v6561_v17, %v6560_v42  ;;  %v5462_v23 = vpack.c.bf16 %v6567_v48, %v6566_v22  ;;  %v6568_v38 = vld [vmem:[#allocation30_spill] sm:$0xff]  ;;  %v5474_v40 = vpack.c.bf16 %v5106_v10, %v6569_v29  ;;  %v6571_v37 = vld [vmem:[#allocation39_spill] sm:$0xff]  ;;  %v6572_v22 = vld [vmem:[#allocation41_spill] sm:$0xff]  ;;  %3159 = vmatpush1.bf16.msra.mxu0 %v3158_v57 }
  0xda   : > { %v5466_v17 = vpack.c.bf16 %v5039_v18, %v6568_v38  ;;  %v5478_v58 = vpack.c.bf16 %v6570_v60, %v5122_v47  ;;  %v5482_v48 = vpack.c.bf16 %v5149_v54, %v6571_v37  ;;  %v6573_v42 = vld [vmem:[#allocation46_spill] sm:$0xff]  ;;  %v6574_v38 = vld [vmem:[#allocation47_spill] sm:$0xff]  ;;  %v6577_v29 = vld [vmem:[#allocation53_spill] sm:$0xff]  ;;  %3543 = vmatpush1.bf16.msra.mxu1 %v3158_v57  ;;  %3161 = vmatprep.subr.bf16.mxu0 %v3160_v16 }
  0xdb   : > { %v5486_v18 = vpack.c.bf16 %v6573_v42, %v6572_v22  ;;  %v5490_v56 = vpack.c.bf16 %v6575_v62, %v6574_v38  ;;  %v6576_v4 = vld [vmem:[#allocation51_spill] sm:$0xff]  ;;  %v5498_v60 = vpack.c.bf16 %v6578_v43, %v6577_v29  ;;  %v5503_v42 = vpack.c.bf16 %v5263_v31, %v5251_v35  ;;  %3545 = vmatprep.subr.bf16.mxu1 %v3160_v16 }
  0xdc   : > { %v5494_v10 = vpack.c.bf16 %v5207_v49, %v6576_v4  ;;  %v5507_v62 = vpack.c.bf16 %v5287_v52, %v5274_v34  ;;  %v5511_v49 = vpack.c.bf16 %v5311_v0, %v5303_v51  ;;  %v5516_v57 = vpack.c.bf16 %v5324_v50, %v5316_v46 }
  0xdd   : > { %v5520_v54 = vpack.c.bf16 %v5390_v19, %v5370_v26  ;;  %v5524_v52 = vpack.c.bf16 %v5414_v36, %v5409_v15  ;;  %v5528_v0 = vpack.c.bf16 %v5445_v55, %v5427_v59  ;;  %v3166_v51 = vpack.c.bf16 %v734_v8, %v722_v13  ;;  %3163 = vmatpush1.bf16.msra.mxu0 %v5356_v5 }
  0xde   : > { %v3168_v16 = vpack.c.bf16 %v752_v53, %v740_v24  ;;  %v746_v43 = vand.u32 4294901760, %v5365_v25  ;;  %v758_v34 = vand.u32 4294901760, %v5380_v9  ;;  %3547 = vmatpush1.bf16.msra.mxu1 %v5356_v5  ;;  %v6579_v50 = vand.u32 4294901760, %v5370_v26  ;;  %3165 = vmatprep.subr.bf16.mxu0 %v5358_v61 }
  0xdf   : > { %v6580_v31 = vand.u32 4294901760, %v5390_v19  ;;  %v6244_v29 = vand.u32 4294901760, %v5427_v59  ;;  %3549 = vmatprep.subr.bf16.mxu1 %v5358_v61  ;;  %v764_v8 = vand.u32 4294901760, %v5385_v39  ;;  %v776_v5 = vand.u32 4294901760, %v5396_v6 }
  0xe0   : > { %v769_v46 = vsub.f32 %v5370_v26, %v6579_v50  ;;  %v6581_v25 = vand.u32 4294901760, %v5409_v15  ;;  %v6582_v24 = vand.u32 4294901760, %v5414_v36  ;;  %v3170_v9 = vpack.c.bf16 %v758_v34, %v746_v43 }
  0xe1   : > { %v781_v35 = vsub.f32 %v5390_v19, %v6580_v31  ;;  %3167 = vmatpush1.bf16.msra.mxu0 %v3166_v51  ;;  %v793_v61 = vsub.f32 %v5427_v59, %v6244_v29  ;;  %v6583_v39 = vand.u32 4294901760, %v5445_v55 }
  0xe2   : > { %v787_v50 = vsub.f32 %v5409_v15, %v6581_v25  ;;  %v799_v31 = vsub.f32 %v5414_v36, %v6582_v24  ;;  %3551 = vmatpush1.bf16.msra.mxu1 %v3166_v51  ;;  %v770_v53 = vand.u32 4294901760, %v769_v46  ;;  %3169 = vmatprep.subr.bf16.mxu0 %v3168_v16  ;;  %v3172_v25 = vpack.c.bf16 %v776_v5, %v764_v8  ;;  %v6584_v24 = vld [vmem:[#allocation60_spill] sm:$0xff]  ;;  %v6587_v8 = vld [vmem:[#allocation74_spill] sm:$0xff] }
  0xe3   : > { %v782_v13 = vand.u32 4294901760, %v781_v35  ;;  %v805_v6 = vsub.f32 %v5445_v55, %v6583_v39  ;;  %3553 = vmatprep.subr.bf16.mxu1 %v3168_v16  ;;  %v794_v34 = vand.u32 4294901760, %v793_v61  ;;  %v6585_v39 = vld [vmem:[#allocation62_spill] sm:$0xff]  ;;  %v6586_v16 = vld [vmem:[#allocation71_spill] sm:$0xff] }
  0xe4   : > { %v788_v15 = vand.u32 4294901760, %v787_v50  ;;  %v800_v19 = vand.u32 4294901760, %v799_v31  ;;  %v3180_v29 = vpack.c.bf16 %v6585_v39, %v6584_v24  ;;  %v3182_v5 = vpack.c.bf16 %v6587_v8, %v6586_v16  ;;  %v6589_v50 = vld [vmem:[#allocation85_spill] sm:$0xff] }
  0xe5   : > { %3171 = vmatpush1.bf16.msra.mxu0 %v3170_v9  ;;  %v3174_v43 = vpack.c.bf16 %v782_v13, %v770_v53  ;;  %v806_v51 = vand.u32 4294901760, %v805_v6  ;;  %v6588_v13 = vld [vmem:[#allocation84_spill] sm:$0xff]  ;;  %v6593_v53 = vld [vmem:[#allocation87_spill] sm:$0xff]  ;;  %v6594_v6 = vld [vmem:[#allocation57_spill] sm:$0xff] }
  0xe6   : > { %3555 = vmatpush1.bf16.msra.mxu1 %v3170_v9  ;;  %3173 = vmatprep.subr.bf16.mxu0 %v3172_v25  ;;  %v3176_v35 = vpack.c.bf16 %v800_v19, %v788_v15  ;;  %v3184_v31 = vpack.c.bf16 %v6589_v50, %v6588_v13  ;;  %v6590_v9 = vld [vmem:[#allocation70_spill] sm:$0xff]  ;;  %v6591_v19 = vld [vmem:[#allocation75_spill] sm:$0xff] }
  0xe7   : > { %3557 = vmatprep.subr.bf16.mxu1 %v3172_v25  ;;  %v3178_v46 = vpack.c.bf16 %v806_v51, %v794_v34  ;;  %v6592_v15 = vld [vmem:[#allocation86_spill] sm:$0xff]  ;;  %v6595_v25 = vld [vmem:[#allocation67_spill] sm:$0xff] }
  0xe8   : > { %v3188_v61 = vpack.c.bf16 %v6593_v53, %v6592_v15  ;;  %v6626_v34 = vld [vmem:[#allocation78_spill] sm:$0xff]  ;;  %v6627_v51 = vld [vmem:[#allocation79_spill] sm:$0xff] }
  0xe9   : > { %3175 = vmatpush1.bf16.msra.mxu0 %v3174_v43 }
  0xea   : > { %3559 = vmatpush1.bf16.msra.mxu1 %v3174_v43  ;;  %3177 = vmatprep.subr.bf16.mxu0 %v3176_v35  ;;  %v6625_v43 = vld [vmem:[#allocation77_spill] sm:$0xff] }
  0xeb   : > { %3561 = vmatprep.subr.bf16.mxu1 %v3176_v35  ;;  %v6628_v35 = vld [vmem:[#allocation80_spill] sm:$0xff] }
  0xed   : > { %3179 = vmatpush1.bf16.msra.mxu0 %v3178_v46 }
  0xee   : > { %3563 = vmatpush1.bf16.msra.mxu1 %v3178_v46  ;;  %3181 = vmatprep.subr.bf16.mxu0 %v3180_v29  ;;  %v6629_v46 = vld [vmem:[#allocation81_spill] sm:$0xff] }
  0xef   : > { %3565 = vmatprep.subr.bf16.mxu1 %v3180_v29  ;;  %v6600_v29 = vld [vmem:[#allocation16_spill] sm:$0xff] }
  0xf0   : > { %811 = vmatmul.mubr.f32.vlgmr.msra.gmra.mrb[0].mxu0 %v6590_v9 }
  0xf1   : > { %2097 = vmatmul.mubr.f32.vlgmr.msra.gmra.mrb[0].mxu1 %v6591_v19  ;;  %3183 = vmatpush1.bf16.msra.mxu0 %v3182_v5 }
  0xf2   : > { %3567 = vmatpush1.bf16.msra.mxu1 %v3182_v5  ;;  %3185 = vmatprep.subr.bf16.mxu0 %v3184_v31  ;;  %v6630_v5 = vld [vmem:[#allocation82_spill] sm:$0xff] }
  0xf3   : > { %3569 = vmatprep.subr.bf16.mxu1 %v3184_v31  ;;  %1011 = vmatprep.mubr.f32.mxu0 %v6594_v6  ;;  %v6631_v31 = vand.u32 4294901760, %v6584_v24 }
  0xf4   : > { %2297 = vmatprep.mubr.f32.mxu1 %v6595_v25 }
  0xf5   : > { %3187 = vmatpush1.bf16.msra.mxu0 %v5374_v28 }
  0xf6   : > { %3571 = vmatpush1.bf16.msra.mxu1 %v5374_v28  ;;  %3189 = vmatprep.subr.bf16.mxu0 %v3188_v61  ;;  %v6612_v28 = vld [vmem:[#allocation43_spill] sm:$0xff] }
  0xf7   : > { %3573 = vmatprep.subr.bf16.mxu1 %v3188_v61  ;;  %v6632_v61 = vand.u32 4294901760, %v6585_v39 }
  0xf9   : > { %3191 = vmatpush1.bf16.msra.mxu0 %v5400_v21 }
  0xfa   : > { %3575 = vmatpush1.bf16.msra.mxu1 %v5400_v21  ;;  %3193 = vmatprep.subr.bf16.mxu0 %v5404_v27  ;;  %v6613_v21 = vld [vmem:[#allocation44_spill] sm:$0xff] }
  0xfb   : > { %3577 = vmatprep.subr.bf16.mxu1 %v5404_v27  ;;  %v6614_v27 = vld [vmem:[#allocation45_spill] sm:$0xff] }
  0xfd   : > { %3195 = vmatpush1.bf16.msra.mxu0 %v5418_v1 }
  0xfe   : > { %3579 = vmatpush1.bf16.msra.mxu1 %v5418_v1  ;;  %3197 = vmatprep.subr.bf16.mxu0 %v5422_v44  ;;  %v6615_v1 = vld [vmem:[#allocation49_spill] sm:$0xff] }
  0xff   : > { %3581 = vmatprep.subr.bf16.mxu1 %v5422_v44  ;;  %v6616_v44 = vld [vmem:[#allocation50_spill] sm:$0xff] }
 0x101   : > { %3199 = vmatpush1.bf16.msra.mxu0 %v5431_v45 }
 0x102   : > { %3583 = vmatpush1.bf16.msra.mxu1 %v5431_v45  ;;  %3201 = vmatprep.subr.bf16.mxu0 %v5435_v11  ;;  %v6617_v45 = vld [vmem:[#allocation54_spill] sm:$0xff] }
 0x103   : > { %3585 = vmatprep.subr.bf16.mxu1 %v5435_v11  ;;  %v6618_v11 = vld [vmem:[#allocation56_spill] sm:$0xff] }
 0x105   : > { %3203 = vmatpush1.bf16.msra.mxu0 %v5439_v2 }
 0x106   : > { %3587 = vmatpush1.bf16.msra.mxu1 %v5439_v2  ;;  %3205 = vmatprep.subr.bf16.mxu0 %v5449_v32  ;;  %v6619_v2 = vld [vmem:[#allocation58_spill] sm:$0xff] }
 0x107   : > { %3589 = vmatprep.subr.bf16.mxu1 %v5449_v32  ;;  %v6599_v32 = vld [vmem:[#allocation15_spill] sm:$0xff] }
 0x109   : > { %3207 = vmatpush1.bf16.msra.mxu0 %v5453_v33 }
 0x10a   : > { %3591 = vmatpush1.bf16.msra.mxu1 %v5453_v33  ;;  %3209 = vmatprep.subr.bf16.mxu0 %v5458_v14  ;;  %v6602_v33 = vand.u32 4294901760, %v6595_v25  ;;  %v6633_v25 = vld [vmem:[#allocation88_spill] sm:$0xff] }
 0x10b   : > { %3593 = vmatprep.subr.bf16.mxu1 %v5458_v14  ;;  %v6620_v14 = vld [vmem:[#allocation59_spill] sm:$0xff] }
 0x10d   : > { %3211 = vmatpush1.bf16.msra.mxu0 %v5462_v23 }
 0x10e   : > { %3595 = vmatpush1.bf16.msra.mxu1 %v5462_v23  ;;  %3213 = vmatprep.subr.bf16.mxu0 %v5466_v17  ;;  %v6622_v23 = vld [vmem:[#allocation64_spill] sm:$0xff] }
 0x10f   : > { %3597 = vmatprep.subr.bf16.mxu1 %v5466_v17  ;;  %v6611_v17 = vld [vmem:[#allocation42_spill] sm:$0xff] }
 0x111   : > { %3215 = vmatpush1.bf16.msra.mxu0 %v5470_v3 }
 0x112   : > { %3599 = vmatpush1.bf16.msra.mxu1 %v5470_v3  ;;  %3217 = vmatprep.subr.bf16.mxu0 %v5474_v40  ;;  %v6603_v3 = vld [vmem:[#allocation17_spill] sm:$0xff] }
 0x113   : > { %3601 = vmatprep.subr.bf16.mxu1 %v5474_v40  ;;  %v6623_v40 = vld [vmem:[#allocation65_spill] sm:$0xff] }
 0x115   : > { %3219 = vmatpush1.bf16.msra.mxu0 %v5478_v58 }
 0x116   : > { %3603 = vmatpush1.bf16.msra.mxu1 %v5478_v58  ;;  %3221 = vmatprep.subr.bf16.mxu0 %v5482_v48  ;;  %v6604_v58 = vld [vmem:[#allocation18_spill] sm:$0xff] }
 0x117   : > { %3605 = vmatprep.subr.bf16.mxu1 %v5482_v48  ;;  %v6596_v48 = vld [vmem:[#allocation14_spill] sm:$0xff] }
 0x119   : > { %3223 = vmatpush1.bf16.msra.mxu0 %v5486_v18 }
 0x11a   : > { %3607 = vmatpush1.bf16.msra.mxu1 %v5486_v18  ;;  %3225 = vmatprep.subr.bf16.mxu0 %v5490_v56  ;;  %v6601_v18 = vand.u32 4294901760, %v6594_v6  ;;  %v3308_v6 = vpack.c.bf16 %v6632_v61, %v6631_v31 }
 0x11b   : > { %3609 = vmatprep.subr.bf16.mxu1 %v5490_v56  ;;  %v6597_v56 = vld [vmem:[#allocation73_spill] sm:$0xff] }
 0x11c   : > { %v6638_v24 = vand.u32 4294901760, %v6597_v56 }
 0x11d   : > { %3227 = vmatpush1.bf16.msra.mxu0 %v5494_v10 }
 0x11e   : > { %3611 = vmatpush1.bf16.msra.mxu1 %v5494_v10  ;;  %3229 = vmatprep.subr.bf16.mxu0 %v5498_v60  ;;  %v6607_v10 = vld [vmem:[#allocation24_spill] sm:$0xff] }
 0x11f   : > { %3613 = vmatprep.subr.bf16.mxu1 %v5498_v60  ;;  %v6605_v60 = vld [vmem:[#allocation19_spill] sm:$0xff] }
 0x121   : > { %3231 = vmatpush1.bf16.msra.mxu0 %v5503_v42 }
 0x122   : > { %3615 = vmatpush1.bf16.msra.mxu1 %v5503_v42  ;;  %3233 = vmatprep.subr.bf16.mxu0 %v5507_v62  ;;  %v6621_v42 = vld [vmem:[#allocation61_spill] sm:$0xff] }
 0x123   : > { %3617 = vmatprep.subr.bf16.mxu1 %v5507_v62  ;;  %v6598_v62 = vld [vmem:[#allocation83_spill] sm:$0xff] }
 0x124   : > { %v6639_v39 = vand.u32 4294901760, %v6598_v62 }
 0x125   : > { %3235 = vmatpush1.bf16.msra.mxu0 %v5511_v49 }
 0x126   : > { %3619 = vmatpush1.bf16.msra.mxu1 %v5511_v49  ;;  %3237 = vmatprep.subr.bf16.mxu0 %v5516_v57  ;;  %v6606_v49 = vld [vmem:[#allocation20_spill] sm:$0xff] }
 0x127   : > { %3621 = vmatprep.subr.bf16.mxu1 %v5516_v57  ;;  %v6624_v57 = vld [vmem:[#allocation76_spill] sm:$0xff] }
 0x129   : > { %3239 = vmatpush1.bf16.msra.mxu0 %v5520_v54 }
 0x12a   : > { %3623 = vmatpush1.bf16.msra.mxu1 %v5520_v54  ;;  %3241 = vmatprep.subr.bf16.mxu0 %v5524_v52  ;;  %v6609_v54 = vld [vmem:[#allocation32_spill] sm:$0xff] }
 0x12b   : > { %3625 = vmatprep.subr.bf16.mxu1 %v5524_v52  ;;  %v6608_v52 = vld [vmem:[#allocation28_spill] sm:$0xff] }
 0x12d   : > { %3243 = vmatpush1.bf16.msra.mxu0 %v5528_v0 }
 0x12e   : > { %3627 = vmatpush1.bf16.msra.mxu1 %v5528_v0  ;;  %3245 = vmatprep.subr.bf16.mxu0 %v6596_v48  ;;  %v6610_v0 = vld [vmem:[#allocation35_spill] sm:$0xff] }
 0x12f   : > { %3629 = vmatprep.subr.bf16.mxu1 %v6596_v48 }
 0x130   : > { %1014 = vmatmul.mubr.f32.vlgmr.msra.gmra.mrb[0].mxu0 %v6597_v56  ;;  %v6645_v56 = vld [vmem:[#allocation63_spill] sm:$0xff] }
 0x131   : > { %2300 = vmatmul.mubr.f32.vlgmr.msra.gmra.mrb[0].mxu1 %v6598_v62  ;;  %3247 = vmatpush1.bf16.msra.mxu0 %v6599_v32  ;;  %v6646_v62 = vand.u32 4294901760, %v4768_v63  ;;  %v6654_v63 = vld [vmem:[#allocation91_spill] sm:$0xff] }
 0x132   : > { %3631 = vmatpush1.bf16.msra.mxu1 %v6599_v32  ;;  %3249 = vmatprep.subr.bf16.mxu0 %v6600_v29 }
 0x133   : > { %3633 = vmatprep.subr.bf16.mxu1 %v6600_v29  ;;  %1151 = vmatprep.mubr.f32.mxu0 %v6601_v18  ;;  %v6634_v18 = vand.u32 4294901760, %v6586_v16  ;;  %v6640_v16 = vand.u32 4294901760, %v4746_v7  ;;  %v6647_v7 = vand.u32 4294901760, %v4773_v30  ;;  %v6656_v30 = vld [vmem:[#allocation92_spill] sm:$0xff] }
 0x134   : > { %2437 = vmatprep.mubr.f32.mxu1 %v6602_v33  ;;  %v6635_v33 = vand.u32 4294901760, %v6587_v8  ;;  %v6641_v8 = vand.u32 4294901760, %v4751_v41  ;;  %v6648_v41 = vand.u32 4294901760, %v4788_v12  ;;  %v6658_v12 = vld [vmem:[#allocation93_spill] sm:$0xff] }
 0x135   : > { %3251 = vmatpush1.bf16.msra.mxu0 %v6603_v3 }
 0x136   : > { %3635 = vmatpush1.bf16.msra.mxu1 %v6603_v3  ;;  %3253 = vmatprep.subr.bf16.mxu0 %v6604_v58  ;;  %v3314_v31 = vpack.c.bf16 %v6641_v8, %v6640_v16  ;;  %v6659_v8 = vand.u32 4294901760, %v6658_v12 }
 0x137   : > { %3637 = vmatprep.subr.bf16.mxu1 %v6604_v58 }
 0x139   : > { %3255 = vmatpush1.bf16.msra.mxu0 %v6605_v60 }
 0x13a   : > { %3639 = vmatpush1.bf16.msra.mxu1 %v6605_v60  ;;  %3257 = vmatprep.subr.bf16.mxu0 %v6606_v49 }
 0x13b   : > { %3641 = vmatprep.subr.bf16.mxu1 %v6606_v49 }
 0x13d   : > { %3259 = vmatpush1.bf16.msra.mxu0 %v6607_v10 }
 0x13e   : > { %3643 = vmatpush1.bf16.msra.mxu1 %v6607_v10  ;;  %3261 = vmatprep.subr.bf16.mxu0 %v6608_v52 }
 0x13f   : > { %3645 = vmatprep.subr.bf16.mxu1 %v6608_v52 }
 0x141   : > { %3263 = vmatpush1.bf16.msra.mxu0 %v6609_v54 }
 0x142   : > { %3647 = vmatpush1.bf16.msra.mxu1 %v6609_v54  ;;  %3265 = vmatprep.subr.bf16.mxu0 %v6610_v0 }
 0x143   : > { %3649 = vmatprep.subr.bf16.mxu1 %v6610_v0 }
 0x145   : > { %3267 = vmatpush1.bf16.msra.mxu0 %v6611_v17 }
 0x146   : > { %3651 = vmatpush1.bf16.msra.mxu1 %v6611_v17  ;;  %3269 = vmatprep.subr.bf16.mxu0 %v6612_v28 }
 0x147   : > { %3653 = vmatprep.subr.bf16.mxu1 %v6612_v28 }
 0x149   : > { %3271 = vmatpush1.bf16.msra.mxu0 %v6613_v21 }
 0x14a   : > { %3655 = vmatpush1.bf16.msra.mxu1 %v6613_v21  ;;  %3273 = vmatprep.subr.bf16.mxu0 %v6614_v27 }
 0x14b   : > { %3657 = vmatprep.subr.bf16.mxu1 %v6614_v27 }
 0x14d   : > { %3275 = vmatpush1.bf16.msra.mxu0 %v6615_v1 }
 0x14e   : > { %3659 = vmatpush1.bf16.msra.mxu1 %v6615_v1  ;;  %3277 = vmatprep.subr.bf16.mxu0 %v6616_v44 }
 0x14f   : > { %3661 = vmatprep.subr.bf16.mxu1 %v6616_v44 }
 0x151   : > { %3279 = vmatpush1.bf16.msra.mxu0 %v6617_v45 }
 0x152   : > { %3663 = vmatpush1.bf16.msra.mxu1 %v6617_v45  ;;  %3281 = vmatprep.subr.bf16.mxu0 %v6618_v11 }
 0x153   : > { %3665 = vmatprep.subr.bf16.mxu1 %v6618_v11 }
 0x155   : > { %3283 = vmatpush1.bf16.msra.mxu0 %v6619_v2 }
 0x156   : > { %3667 = vmatpush1.bf16.msra.mxu1 %v6619_v2  ;;  %3285 = vmatprep.subr.bf16.mxu0 %v6620_v14 }
 0x157   : > { %3669 = vmatprep.subr.bf16.mxu1 %v6620_v14 }
 0x159   : > { %3287 = vmatpush1.bf16.msra.mxu0 %v6621_v42 }
 0x15a   : > { %3671 = vmatpush1.bf16.msra.mxu1 %v6621_v42  ;;  %3289 = vmatprep.subr.bf16.mxu0 %v6622_v23 }
 0x15b   : > { %3673 = vmatprep.subr.bf16.mxu1 %v6622_v23 }
 0x15d   : > { %3291 = vmatpush1.bf16.msra.mxu0 %v6623_v40 }
 0x15e   : > { %3675 = vmatpush1.bf16.msra.mxu1 %v6623_v40  ;;  %3293 = vmatprep.subr.bf16.mxu0 %v6624_v57 }
 0x15f   : > { %3677 = vmatprep.subr.bf16.mxu1 %v6624_v57 }
 0x161   : > { %3295 = vmatpush1.bf16.msra.mxu0 %v6625_v43 }
 0x162   : > { %3679 = vmatpush1.bf16.msra.mxu1 %v6625_v43  ;;  %3297 = vmatprep.subr.bf16.mxu0 %v6626_v34 }
 0x163   : > { %3681 = vmatprep.subr.bf16.mxu1 %v6626_v34 }
 0x165   : > { %3299 = vmatpush1.bf16.msra.mxu0 %v6627_v51 }
 0x166   : > { %3683 = vmatpush1.bf16.msra.mxu1 %v6627_v51  ;;  %3301 = vmatprep.subr.bf16.mxu0 %v6628_v35 }
 0x167   : > { %3685 = vmatprep.subr.bf16.mxu1 %v6628_v35  ;;  %v3310_v35 = vpack.c.bf16 %v6635_v33, %v6634_v18 }
 0x169   : > { %3303 = vmatpush1.bf16.msra.mxu0 %v6629_v46 }
 0x16a   : > { %3687 = vmatpush1.bf16.msra.mxu1 %v6629_v46  ;;  %3305 = vmatprep.subr.bf16.mxu0 %v6630_v5  ;;  %v6636_v46 = vand.u32 4294901760, %v6588_v13  ;;  %v6642_v13 = vand.u32 4294901760, %v6592_v15  ;;  %v6649_v15 = vand.u32 4294901760, %v4805_v20  ;;  %v6660_v20 = vld [vmem:[#allocation94_spill] sm:$0xff] }
 0x16b   : > { %3689 = vmatprep.subr.bf16.mxu1 %v6630_v5  ;;  %v6637_v5 = vand.u32 4294901760, %v6589_v50  ;;  %v6643_v50 = vand.u32 4294901760, %v6593_v53  ;;  %v6650_v53 = vld [vmem:[#allocation89_spill] sm:$0xff] }
 0x16c   : > { %v6651_v61 = vand.u32 4294901760, %v6650_v53 }
 0x16d   : > { %3307 = vmatpush1.bf16.msra.mxu0 %v6633_v25  ;;  %v3312_v51 = vpack.c.bf16 %v6637_v5, %v6636_v46  ;;  %v3316_v46 = vpack.c.bf16 %v6643_v50, %v6642_v13  ;;  %v6644_v5 = vld [vmem:[#allocation55_spill] sm:$0xff] }
 0x16e   : > { %3691 = vmatpush1.bf16.msra.mxu1 %v6633_v25  ;;  %3309 = vmatprep.subr.bf16.mxu0 %v3308_v6  ;;  %v6662_v50 = vld [vmem:[#allocation95_spill] sm:$0xff] }
 0x16f   : > { %3693 = vmatprep.subr.bf16.mxu1 %v3308_v6  ;;  %v6652_v6 = vld [vmem:[#allocation90_spill] sm:$0xff] }
 0x170   : > { %1155 = vmatmul.mubr.f32.vlgmr.msra.gmra.mrb[0].mxu0 %v6638_v24  ;;  %v6653_v18 = vand.u32 4294901760, %v6652_v6  ;;  %v6655_v24 = vand.u32 4294901760, %v6654_v63  ;;  %v6670_v6 = vld [vmem:[#allocation99_spill] sm:$0xff] }
 0x171   : > { %2441 = vmatmul.mubr.f32.vlgmr.msra.gmra.mrb[0].mxu1 %v6639_v39  ;;  %3311 = vmatpush1.bf16.msra.mxu0 %v3310_v35  ;;  %v6657_v39 = vand.u32 4294901760, %v6656_v30  ;;  %v6674_v30 = vld [vmem:[#allocation22_spill] sm:$0xff] }
 0x172   : > { %3695 = vmatpush1.bf16.msra.mxu1 %v3310_v35  ;;  %3313 = vmatprep.subr.bf16.mxu0 %v3312_v51  ;;  %v3318_v35 = vpack.c.bf16 %v6647_v7, %v6646_v62  ;;  %v3322_v33 = vpack.c.bf16 %v6653_v18, %v6651_v61  ;;  %v6664_v62 = vld [vmem:[#allocation96_spill] sm:$0xff]  ;;  %v6671_v18 = vand.u32 4294901760, %v6670_v6 }
 0x173   : > { %3697 = vmatprep.subr.bf16.mxu1 %v3312_v51  ;;  %1418 = vmatprep.mubr.f32.mxu0 %v6644_v5  ;;  %v3320_v51 = vpack.c.bf16 %v6649_v15, %v6648_v41  ;;  %v3324_v16 = vpack.c.bf16 %v6657_v39, %v6655_v24  ;;  %v6665_v7 = vand.u32 4294901760, %v6664_v62  ;;  %v6666_v41 = vld [vmem:[#allocation97_spill] sm:$0xff]  ;;  %v6675_v39 = vand.u32 4294901760, %v6674_v30  ;;  %v6682_v62 = vld [vmem:[#allocation27_spill] sm:$0xff] }
 0x174   : > { %2704 = vmatprep.mubr.f32.mxu1 %v6645_v56  ;;  %v6667_v15 = vand.u32 4294901760, %v6666_v41 }
 0x175   : > { %3315 = vmatpush1.bf16.msra.mxu0 %v3314_v31 }
 0x176   : > { %3699 = vmatpush1.bf16.msra.mxu1 %v3314_v31  ;;  %3317 = vmatprep.subr.bf16.mxu0 %v3316_v46  ;;  %v6661_v31 = vand.u32 4294901760, %v6660_v20  ;;  %v6678_v20 = vld [vmem:[#allocation25_spill] sm:$0xff] }
 0x177   : > { %3701 = vmatprep.subr.bf16.mxu1 %v3316_v46  ;;  %v6663_v46 = vand.u32 4294901760, %v6662_v50 }
 0x178   : > { %v3326_v13 = vpack.c.bf16 %v6661_v31, %v6659_v8  ;;  %v6679_v31 = vand.u32 4294901760, %v6678_v20 }
 0x179   : > { %3319 = vmatpush1.bf16.msra.mxu0 %v3318_v35 }
 0x17a   : > { %3703 = vmatpush1.bf16.msra.mxu1 %v3318_v35  ;;  %3321 = vmatprep.subr.bf16.mxu0 %v3320_v51  ;;  %v3328_v35 = vpack.c.bf16 %v6665_v7, %v6663_v46  ;;  %v6683_v7 = vand.u32 4294901760, %v6682_v62 }
 0x17b   : > { %3705 = vmatprep.subr.bf16.mxu1 %v3320_v51  ;;  %v6668_v51 = vld [vmem:[#allocation98_spill] sm:$0xff] }
 0x17c   : > { %v6669_v53 = vand.u32 4294901760, %v6668_v51  ;;  %v6686_v51 = vld [vmem:[#allocation30_spill] sm:$0xff] }
 0x17d   : > { %3323 = vmatpush1.bf16.msra.mxu0 %v3322_v33 }
 0x17e   : > { %3707 = vmatpush1.bf16.msra.mxu1 %v3322_v33  ;;  %3325 = vmatprep.subr.bf16.mxu0 %v3324_v16  ;;  %v3330_v61 = vpack.c.bf16 %v6669_v53, %v6667_v15  ;;  %v6672_v33 = vld [vmem:[#allocation21_spill] sm:$0xff]  ;;  %v6687_v53 = vand.u32 4294901760, %v6686_v51  ;;  %v6704_v51 = vand.u32 4294901760, %v6572_v22 }
 0x17f   : > { %3709 = vmatprep.subr.bf16.mxu1 %v3324_v16  ;;  %v6673_v63 = vand.u32 4294901760, %v6672_v33  ;;  %v6676_v16 = vld [vmem:[#allocation23_spill] sm:$0xff]  ;;  %v6690_v33 = vld [vmem:[#allocation33_spill] sm:$0xff] }
 0x180   : > { %v6677_v12 = vand.u32 4294901760, %v6676_v16  ;;  %v6694_v16 = vld [vmem:[#allocation36_spill] sm:$0xff]  ;;  %v6713_v22 = vld [vmem:[#allocation53_spill] sm:$0xff] }
 0x181   : > { %3327 = vmatpush1.bf16.msra.mxu0 %v3326_v13  ;;  %v3332_v24 = vpack.c.bf16 %v6673_v63, %v6671_v18  ;;  %v6691_v63 = vand.u32 4294901760, %v6690_v33 }
 0x182   : > { %3711 = vmatpush1.bf16.msra.mxu1 %v3326_v13  ;;  %3329 = vmatprep.subr.bf16.mxu0 %v3328_v35  ;;  %v3334_v8 = vpack.c.bf16 %v6677_v12, %v6675_v39  ;;  %v6680_v13 = vld [vmem:[#allocation26_spill] sm:$0xff]  ;;  %v6695_v12 = vand.u32 4294901760, %v6694_v16  ;;  %v6714_v16 = vand.u32 4294901760, %v6713_v22 }
 0x183   : > { %3713 = vmatprep.subr.bf16.mxu1 %v3328_v35  ;;  %v6681_v50 = vand.u32 4294901760, %v6680_v13  ;;  %v6684_v35 = vld [vmem:[#allocation29_spill] sm:$0xff]  ;;  %v6698_v13 = vand.u32 4294901760, %v5122_v47  ;;  %v6707_v47 = vand.u32 4294901760, %v6574_v38 }
 0x184   : > { %v6685_v41 = vand.u32 4294901760, %v6684_v35  ;;  %v6702_v35 = vld [vmem:[#allocation40_spill] sm:$0xff]  ;;  %v6717_v38 = vld [vmem:[#allocation101_spill] sm:$0xff] }
 0x185   : > { %3331 = vmatpush1.bf16.msra.mxu0 %v3330_v61  ;;  %v3336_v46 = vpack.c.bf16 %v6681_v50, %v6679_v31  ;;  %v6699_v50 = vld [vmem:[#allocation38_spill] sm:$0xff] }
 0x186   : > { %3715 = vmatpush1.bf16.msra.mxu1 %v3330_v61  ;;  %3333 = vmatprep.subr.bf16.mxu0 %v3332_v24  ;;  %v3338_v15 = vpack.c.bf16 %v6685_v41, %v6683_v7  ;;  %v6688_v61 = vld [vmem:[#allocation31_spill] sm:$0xff]  ;;  %v6701_v7 = vand.u32 4294901760, %v6571_v37  ;;  %v6703_v41 = vand.u32 4294901760, %v6702_v35  ;;  %v6710_v37 = vand.u32 4294901760, %v6576_v4 }
 0x187   : > { %3717 = vmatprep.subr.bf16.mxu1 %v3332_v24  ;;  %v6689_v6 = vand.u32 4294901760, %v6688_v61  ;;  %v6692_v24 = vld [vmem:[#allocation34_spill] sm:$0xff]  ;;  %v6721_v4 = vld [vmem:[#allocation103_spill] sm:$0xff] }
 0x188   : > { %v6693_v30 = vand.u32 4294901760, %v6692_v24  ;;  %v6711_v24 = vld [vmem:[#allocation52_spill] sm:$0xff] }
 0x189   : > { %3335 = vmatpush1.bf16.msra.mxu0 %v3334_v8  ;;  %v3340_v18 = vpack.c.bf16 %v6689_v6, %v6687_v53  ;;  %v6705_v53 = vld [vmem:[#allocation46_spill] sm:$0xff] }
 0x18a   : > { %3719 = vmatpush1.bf16.msra.mxu1 %v3334_v8  ;;  %3337 = vmatprep.subr.bf16.mxu0 %v3336_v46  ;;  %v3342_v39 = vpack.c.bf16 %v6693_v30, %v6691_v63  ;;  %v6696_v8 = vld [vmem:[#allocation37_spill] sm:$0xff]  ;;  %v6706_v61 = vand.u32 4294901760, %v6705_v53  ;;  %v6712_v30 = vand.u32 4294901760, %v6711_v24  ;;  %v6727_v53 = vld [vmem:[#allocation66_spill] sm:$0xff]  ;;  %v6733_v24 = vand.u32 4294901760, %v5370_v26  ;;  %v6742_v26 = vld [vmem:[#allocation80_spill] sm:$0xff] }
 0x18b   : > { %3721 = vmatprep.subr.bf16.mxu1 %v3336_v46  ;;  %v6697_v20 = vand.u32 4294901760, %v6696_v8  ;;  %v6700_v46 = vand.u32 4294901760, %v6699_v50 }
 0x18c   : > { %v3350_v6 = vpack.c.bf16 %v6706_v61, %v6704_v51  ;;  %v6728_v61 = vand.u32 4294901760, %v6727_v53 }
 0x18d   : > { %3339 = vmatpush1.bf16.msra.mxu0 %v3338_v15  ;;  %v3344_v31 = vpack.c.bf16 %v6697_v20, %v6695_v12  ;;  %v3346_v62 = vpack.c.bf16 %v6700_v46, %v6698_v13  ;;  %v6715_v12 = vld [vmem:[#allocation100_spill] sm:$0xff]  ;;  %v6719_v13 = vld [vmem:[#allocation102_spill] sm:$0xff] }
 0x18e   : > { %3723 = vmatpush1.bf16.msra.mxu1 %v3338_v15  ;;  %3341 = vmatprep.subr.bf16.mxu0 %v3340_v18  ;;  %v3348_v15 = vpack.c.bf16 %v6703_v41, %v6701_v7  ;;  %v6716_v8 = vand.u32 4294901760, %v6715_v12  ;;  %v6720_v50 = vand.u32 4294901760, %v6719_v13  ;;  %v6723_v7 = vld [vmem:[#allocation104_spill] sm:$0xff] }
 0x18f   : > { %3725 = vmatprep.subr.bf16.mxu1 %v3340_v18  ;;  %v6708_v18 = vld [vmem:[#allocation48_spill] sm:$0xff]  ;;  %v6724_v35 = vand.u32 4294901760, %v6723_v7 }
 0x190   : > { %v6709_v33 = vand.u32 4294901760, %v6708_v18  ;;  %v3356_v20 = vpack.c.bf16 %v6716_v8, %v6714_v16  ;;  %v6736_v16 = vld [vmem:[#allocation69_spill] sm:$0xff]  ;;  %v6738_v8 = vand.u32 4294901760, %v5414_v36 }
 0x191   : > { %3343 = vmatpush1.bf16.msra.mxu0 %v3342_v39  ;;  %v6737_v12 = vand.u32 4294901760, %v6736_v16  ;;  %v6743_v36 = vld [vmem:[#allocation81_spill] sm:$0xff] }
 0x192   : > { %3727 = vmatpush1.bf16.msra.mxu1 %v3342_v39  ;;  %3345 = vmatprep.subr.bf16.mxu0 %v3344_v31  ;;  %v3352_v63 = vpack.c.bf16 %v6709_v33, %v6707_v47  ;;  %v3354_v39 = vpack.c.bf16 %v6712_v30, %v6710_v37  ;;  %v6729_v47 = vld [vmem:[#allocation106_spill] sm:$0xff]  ;;  %v6731_v33 = vld [vmem:[#allocation107_spill] sm:$0xff]  ;;  %v6734_v30 = vld [vmem:[#allocation68_spill] sm:$0xff] }
 0x193   : > { %3729 = vmatprep.subr.bf16.mxu1 %v3344_v31  ;;  %v6718_v31 = vand.u32 4294901760, %v6717_v38  ;;  %v6730_v18 = vand.u32 4294901760, %v6729_v47  ;;  %v6739_v38 = vand.u32 4294901760, %v5427_v59  ;;  %v6741_v59 = vld [vmem:[#allocation79_spill] sm:$0xff] }
 0x195   : > { %3347 = vmatpush1.bf16.msra.mxu0 %v3346_v62  ;;  %v3358_v46 = vpack.c.bf16 %v6720_v50, %v6718_v31  ;;  %v6740_v31 = vand.u32 4294901760, %v5445_v55  ;;  %v6744_v55 = vld [vmem:[#allocation82_spill] sm:$0xff] }
 0x196   : > { %3731 = vmatpush1.bf16.msra.mxu1 %v3346_v62  ;;  %3349 = vmatprep.subr.bf16.mxu0 %v3348_v15  ;;  %v6722_v62 = vand.u32 4294901760, %v6721_v4 }
 0x197   : > { %3733 = vmatprep.subr.bf16.mxu1 %v3348_v15  ;;  %v6725_v15 = vld [vmem:[#allocation105_spill] sm:$0xff]  ;;  %v3370_v13 = vpack.c.bf16 %v6740_v31, %v6739_v38 }
 0x198   : > { %v3360_v41 = vpack.c.bf16 %v6724_v35, %v6722_v62  ;;  %v6726_v51 = vand.u32 4294901760, %v6725_v15 }
 0x199   : > { %3351 = vmatpush1.bf16.msra.mxu0 %v3350_v6 }
 0x19a   : > { %3735 = vmatpush1.bf16.msra.mxu1 %v3350_v6  ;;  %3353 = vmatprep.subr.bf16.mxu0 %v3352_v63  ;;  %v3362_v6 = vpack.c.bf16 %v6728_v61, %v6726_v51 }
 0x19b   : > { %3737 = vmatprep.subr.bf16.mxu1 %v3352_v63  ;;  %v6732_v63 = vand.u32 4294901760, %v6731_v33 }
 0x19d   : > { %3355 = vmatpush1.bf16.msra.mxu0 %v3354_v39  ;;  %v3364_v37 = vpack.c.bf16 %v6732_v63, %v6730_v18 }
 0x19e   : > { %3739 = vmatpush1.bf16.msra.mxu1 %v3354_v39  ;;  %3357 = vmatprep.subr.bf16.mxu0 %v3356_v20  ;;  %v6735_v39 = vand.u32 4294901760, %v6734_v30 }
 0x19f   : > { %3741 = vmatprep.subr.bf16.mxu1 %v3356_v20  ;;  %v3368_v20 = vpack.c.bf16 %v6738_v8, %v6737_v12 }
 0x1a0   : > { %v3366_v22 = vpack.c.bf16 %v6735_v39, %v6733_v24 }
 0x1a1   : > { %3359 = vmatpush1.bf16.msra.mxu0 %v3358_v46 }
 0x1a2   : > { %3743 = vmatpush1.bf16.msra.mxu1 %v3358_v46  ;;  %3361 = vmatprep.subr.bf16.mxu0 %v3360_v41 }
 0x1a3   : > { %3745 = vmatprep.subr.bf16.mxu1 %v3360_v41 }
 0x1a5   : > { %3363 = vmatpush1.bf16.msra.mxu0 %v3362_v6 }
 0x1a6   : > { %3747 = vmatpush1.bf16.msra.mxu1 %v3362_v6  ;;  %3365 = vmatprep.subr.bf16.mxu0 %v3364_v37 }
 0x1a7   : > { %3749 = vmatprep.subr.bf16.mxu1 %v3364_v37 }
 0x1a9   : > { %3367 = vmatpush1.bf16.msra.mxu0 %v3366_v22 }
 0x1aa   : > { %3751 = vmatpush1.bf16.msra.mxu1 %v3366_v22  ;;  %3369 = vmatprep.subr.bf16.mxu0 %v3368_v20 }
 0x1ab   : > { %3753 = vmatprep.subr.bf16.mxu1 %v3368_v20 }
 0x1ad   : > { %3371 = vmatpush1.bf16.msra.mxu0 %v3370_v13 }
 0x1ae   : > { %3755 = vmatpush1.bf16.msra.mxu1 %v3370_v13  ;;  %3373 = vmatprep.subr.bf16.mxu0 %v6596_v48 }
 0x1af   : > { %3757 = vmatprep.subr.bf16.mxu1 %v6596_v48 }
 0x1b0   : > { %1420 = vmatmul.mubr.f32.vlgmr.msra.gmra.mrb[0].mxu0 %v6590_v9 }
 0x1b1   : > { %2706 = vmatmul.mubr.f32.vlgmr.msra.gmra.mrb[0].mxu1 %v6591_v19  ;;  %3375 = vmatpush1.bf16.msra.mxu0 %v6599_v32 }
 0x1b2   : > { %3759 = vmatpush1.bf16.msra.mxu1 %v6599_v32  ;;  %3377 = vmatprep.subr.bf16.mxu0 %v6600_v29 }
 0x1b3   : > { %3761 = vmatprep.subr.bf16.mxu1 %v6600_v29  ;;  %1555 = vmatprep.mubr.f32.mxu0 %v6644_v5 }
 0x1b4   : > { %2841 = vmatprep.mubr.f32.mxu1 %v6645_v56 }
 0x1b5   : > { %3379 = vmatpush1.bf16.msra.mxu0 %v6603_v3 }
 0x1b6   : > { %3763 = vmatpush1.bf16.msra.mxu1 %v6603_v3  ;;  %3381 = vmatprep.subr.bf16.mxu0 %v6604_v58 }
 0x1b7   : > { %3765 = vmatprep.subr.bf16.mxu1 %v6604_v58 }
 0x1b9   : > { %3383 = vmatpush1.bf16.msra.mxu0 %v6605_v60 }
 0x1ba   : > { %3767 = vmatpush1.bf16.msra.mxu1 %v6605_v60  ;;  %3385 = vmatprep.subr.bf16.mxu0 %v6606_v49 }
 0x1bb   : > { %3769 = vmatprep.subr.bf16.mxu1 %v6606_v49 }
 0x1bd   : > { %3387 = vmatpush1.bf16.msra.mxu0 %v6607_v10 }
 0x1be   : > { %3771 = vmatpush1.bf16.msra.mxu1 %v6607_v10  ;;  %3389 = vmatprep.subr.bf16.mxu0 %v6608_v52 }
 0x1bf   : > { %3773 = vmatprep.subr.bf16.mxu1 %v6608_v52 }
 0x1c1   : > { %3391 = vmatpush1.bf16.msra.mxu0 %v6609_v54 }
 0x1c2   : > { %3775 = vmatpush1.bf16.msra.mxu1 %v6609_v54  ;;  %3393 = vmatprep.subr.bf16.mxu0 %v6610_v0 }
 0x1c3   : > { %3777 = vmatprep.subr.bf16.mxu1 %v6610_v0 }
 0x1c5   : > { %3395 = vmatpush1.bf16.msra.mxu0 %v6611_v17 }
 0x1c6   : > { %3779 = vmatpush1.bf16.msra.mxu1 %v6611_v17  ;;  %3397 = vmatprep.subr.bf16.mxu0 %v6612_v28 }
 0x1c7   : > { %3781 = vmatprep.subr.bf16.mxu1 %v6612_v28 }
 0x1c9   : > { %3399 = vmatpush1.bf16.msra.mxu0 %v6613_v21 }
 0x1ca   : > { %3783 = vmatpush1.bf16.msra.mxu1 %v6613_v21  ;;  %3401 = vmatprep.subr.bf16.mxu0 %v6614_v27 }
 0x1cb   : > { %3785 = vmatprep.subr.bf16.mxu1 %v6614_v27 }
 0x1cd   : > { %3403 = vmatpush1.bf16.msra.mxu0 %v6615_v1 }
 0x1ce   : > { %3787 = vmatpush1.bf16.msra.mxu1 %v6615_v1  ;;  %3405 = vmatprep.subr.bf16.mxu0 %v6616_v44 }
 0x1cf   : > { %3789 = vmatprep.subr.bf16.mxu1 %v6616_v44 }
 0x1d1   : > { %3407 = vmatpush1.bf16.msra.mxu0 %v6617_v45 }
 0x1d2   : > { %3791 = vmatpush1.bf16.msra.mxu1 %v6617_v45  ;;  %3409 = vmatprep.subr.bf16.mxu0 %v6618_v11 }
 0x1d3   : > { %3793 = vmatprep.subr.bf16.mxu1 %v6618_v11 }
 0x1d5   : > { %3411 = vmatpush1.bf16.msra.mxu0 %v6619_v2 }
 0x1d6   : > { %3795 = vmatpush1.bf16.msra.mxu1 %v6619_v2  ;;  %3413 = vmatprep.subr.bf16.mxu0 %v6620_v14 }
 0x1d7   : > { %3797 = vmatprep.subr.bf16.mxu1 %v6620_v14 }
 0x1d9   : > { %3415 = vmatpush1.bf16.msra.mxu0 %v6621_v42 }
 0x1da   : > { %3799 = vmatpush1.bf16.msra.mxu1 %v6621_v42  ;;  %3417 = vmatprep.subr.bf16.mxu0 %v6622_v23 }
 0x1db   : > { %3801 = vmatprep.subr.bf16.mxu1 %v6622_v23 }
 0x1dd   : > { %3419 = vmatpush1.bf16.msra.mxu0 %v6623_v40 }
 0x1de   : > { %3803 = vmatpush1.bf16.msra.mxu1 %v6623_v40  ;;  %3421 = vmatprep.subr.bf16.mxu0 %v6624_v57 }
 0x1df   : > { %3805 = vmatprep.subr.bf16.mxu1 %v6624_v57 }
 0x1e1   : > { %3423 = vmatpush1.bf16.msra.mxu0 %v6625_v43 }
 0x1e2   : > { %3807 = vmatpush1.bf16.msra.mxu1 %v6625_v43  ;;  %3425 = vmatprep.subr.bf16.mxu0 %v6626_v34 }
 0x1e3   : > { %3809 = vmatprep.subr.bf16.mxu1 %v6626_v34 }
 0x1e5   : > { %3427 = vmatpush1.bf16.msra.mxu0 %v6741_v59 }
 0x1e6   : > { %3811 = vmatpush1.bf16.msra.mxu1 %v6741_v59  ;;  %3429 = vmatprep.subr.bf16.mxu0 %v6742_v26 }
 0x1e7   : > { %3813 = vmatprep.subr.bf16.mxu1 %v6742_v26 }
 0x1e9   : > { %3431 = vmatpush1.bf16.msra.mxu0 %v6743_v36 }
 0x1ea   : > { %3815 = vmatpush1.bf16.msra.mxu1 %v6743_v36  ;;  %3433 = vmatprep.subr.bf16.mxu0 %v6744_v55 }
 0x1eb   : > { %3817 = vmatprep.subr.bf16.mxu1 %v6744_v55 }
 0x1ed   : > { %3435 = vmatpush1.bf16.msra.mxu0 %v6633_v25 }
 0x1ee   : > { %3819 = vmatpush1.bf16.msra.mxu1 %v6633_v25 }
 0x1f0   : > { %1557 = vmatmul.mubr.f32.vlgmr.msra.gmra.mrb[0].mxu0 %v6590_v9 }
 0x1f1   : > { %2843 = vmatmul.mubr.f32.vlgmr.msra.gmra.mrb[0].mxu1 %v6591_v19 }
 0x2c3   : > { %v1558_v48 = vpop.f32.mrb[0].mxu0 }
 0x2c4   : > { %v2844_v32 = vpop.f32.mrb[0].mxu1  ;;  %v2849_v29 = vmul.f32 %v1558_v48, %v1558_v48  ;;  %v1560_v3 = vpop.f32.mrb[1].mxu0 }
 0x2c5   : > { %v2846_v58 = vpop.f32.mrb[1].mxu1  ;;  %v2850_v60 = vmul.f32 %v1560_v3, %v1560_v3 }
 0x2c6   : > { %v2851_v49 = vsub.f32 %v2844_v32, %v2849_v29 }
 0x2c7   : > { %v2852_v10 = vsub.f32 %v2846_v58, %v2850_v60 }
 0x2c8   : > { %v2853_v52 = vmax.f32 %v2851_v49, 0.0 }
 0x2c9   : > { %v2854_v54 = vmax.f32 %v2852_v10, 0.0 }
 0x2ca   : > { %3906 = vrsqrt.f32 %v2853_v52  ;;  %vm2857_vm0 = vcmp.eq.f32.partialorder %v2853_v52, inf  ;;  %v2860_v19 = vand.u32 2147483648, %v2853_v52  ;;  %vm2859_vm1 = vcmp.eq.f32.partialorder %v2853_v52, 0.0 }
 0x2cb   : > { %3908 = vrsqrt.f32 %v2854_v54  ;;  %vm2864_vm2 = vcmp.eq.f32.partialorder %v2854_v54, inf  ;;  %v2867_v27 = vand.u32 2147483648, %v2854_v54  ;;  %vm2866_vm3 = vcmp.eq.f32.partialorder %v2854_v54, 0.0 }
 0x2d4   : > { %v3907_v0 = vpop.eup %3906 }
 0x2d5   : > { %v3909_v17 = vpop.eup %3908  ;;  %v2856_v9 = vmul.f32 %v3907_v0, %v2853_v52 }
 0x2d6   : > { %v2863_v28 = vmul.f32 %v3909_v17, %v2854_v54 }
 0x2d7   : > { %v2858_v21 = vsel %vm2857_vm0, %v2853_v52, %v2856_v9 }
 0x2d8   : > { %v2865_v1 = vsel %vm2864_vm2, %v2854_v54, %v2863_v28  ;;  %v2861_v44 = vsel %vm2859_vm1, %v2860_v19, %v2858_v21 }
 0x2d9   : > { %v2868_v45 = vsel %vm2866_vm3, %v2867_v27, %v2865_v1  ;;  %v3840_v11 = vround.rtne.f32 %v2861_v44  ;;  %2881 = vst [vmem:[%s212_s20] sm:$0xff] %v2861_v44 }
 0x2da   : > { %v3841_v2 = vround.rtne.f32 %v2868_v45  ;;  %2882 = vst [vmem:[%s212_s20 + $0x8] sm:$0xff] %v2868_v45 }
 0x2db   : > { %v2871_v14 = vmin.f32 %v3840_v11, 1.0 }
 0x2dc   : > { %3981 = shalt.err (!%p3978_p7)
}
 0x2dd   : > { %s3982_s28 = scalar_lea.hbm %s5907_s5, 256  ;;  %s3986_s6 = scalar_lea.hbm %s5986_s3, 512 }
 0x2de   : > { %p3983_p9 = scmp.ne.s32.totalorder %s5907_s5, %s3982_s28  ;;  %p3987_p0 = scmp.lt.u32.totalorder %s5907_s5, %s5986_s3 }
 0x2df   : > { %p3988_p11 = scmp.lt.u32.totalorder %s3986_s6, %s3982_s28  ;;  %p3990_p4 = scmp.lt.u32.totalorder %s3982_s28, %s5907_s5 }
 0x2e0   : > { %p3984_p2 = pnand %p3983_p9, %p4189_p12 }
 0x2e1   : > { %p3989_p1 = por %p3988_p11, %p3987_p0 }
 0x2e2   : > { %p3985_p5 = pneg %p3984_p2 }
 0x2e3   : > { %p3991_p6 = por %p3990_p4, %p3989_p1 }
 0x2e5   : > { %p3992_p8 = pnand %p3991_p6, %p3985_p5 }
 0x2e7   : > { %3995 = shalt.err (!%p3992_p8)
}
 0x2e8   : > { %3849 = dma.vmem_to_hbm [thread:$0]  (%p4189_p12), %s5909_s4, 256, %s5907_s5, %s2889_s8   ;;  %v2872_v42 = vmin.f32 %v3841_v2, 1.0  ;;  %v2873_v23 = vmax.f32 %v2871_v14, 0.0 }
 0x2e9   : > { %s205_s25 = scalar_lea.vmem [#allocation7], %s4237_s22  ;;  %s5939_s11 = scalar_lea.hbm %s5985_s2, %s3050_s18 }
 0x2ea   : > { %v2874_v40 = vmax.f32 %v2872_v42, 0.0  ;;  %v2875_v57 = vsub.f32 %v2873_v23, %v2861_v44  ;;  %s2903_s26 = sshll.u32 %s205_s25, 4  ;;  %s2884_s4 = scalar_lea.sflag [#allocation4], %s4234_s30  ;;  %s5941_s26 = int_to_ptr.vmem [resolvable:$true] %s2903_s26 }
 0x2eb   : > { %s3996_s5 = scalar_lea.vmem %s5941_s26, 256  ;;  %s4077_s22 = smov [#allocation7]  }
 0x2ec   : > { %v2876_v43 = vsub.f32 %v2874_v40, %v2868_v45  ;;  %v2877_v34 = vadd.f32 %v2875_v57, %v2861_v44  ;;  %p3997_p10 = scmp.ne.s32.totalorder %s5941_s26, %s3996_s5  ;;  %s4000_s16 = sshll.u32 %s4077_s22, 4  ;;  %s4001_s16 = int_to_ptr.vmem [resolvable:$false] %s4000_s16 }
 0x2ed   : > { %s4002_s8 = scalar_lea.vmem %s4001_s16, 512  ;;  %p4003_p7 = scmp.lt.s32.totalorder %s5941_s26, %s4001_s16 }
 0x2ee   : > { %v2878_v25 = vadd.f32 %v2876_v43, %v2868_v45  ;;  %2879 = vst [vmem:[%s205_s25] sm:$0xff] %v2877_v34  ;;  %p3998_p13 = pnand %p3997_p10, %p4189_p12  ;;  %p4004_p9 = scmp.lt.s32.totalorder %s4002_s8, %s3996_s5 }
 0x2f0   : > { %2880 = vst [vmem:[%s205_s25 + $0x8] sm:$0xff] %v2878_v25  ;;  %p3999_p3 = pneg %p3998_p13  ;;  %p4005_p2 = por %p4004_p9, %p4003_p7 }
 0x2f2   : > { %p4006_p5 = pnand %p4005_p2, %p3999_p3 }
 0x2f4   : > { %4009 = shalt.err (!%p4006_p5)
}
 0x2f5   : > { %s4010_s30 = scalar_lea.hbm %s5939_s11, 256  ;;  %s4014_s28 = scalar_lea.hbm %s5985_s2, 512 }
 0x2f6   : > { %p4011_p0 = scmp.ne.s32.totalorder %s5939_s11, %s4010_s30  ;;  %p4015_p4 = scmp.lt.u32.totalorder %s5939_s11, %s5985_s2 }
 0x2f7   : > { %p4016_p6 = scmp.lt.u32.totalorder %s4014_s28, %s4010_s30  ;;  %p4018_p10 = scmp.lt.u32.totalorder %s4010_s30, %s5939_s11 }
 0x2f8   : > { %p4012_p11 = pnand %p4011_p0, %p4189_p12 }
 0x2f9   : > { %p4017_p8 = por %p4016_p6, %p4015_p4 }
 0x2fa   : > { %p4013_p1 = pneg %p4012_p11 }
 0x2fb   : > { %p4019_p13 = por %p4018_p10, %p4017_p8 }
 0x2fd   : > { %p4020_p3 = pnand %p4019_p13, %p4013_p1 }
 0x2ff   : > { %4023 = shalt.err (!%p4020_p3)
}
 0x300   : > { %3848 = dma.vmem_to_hbm [thread:$0]  (%p4189_p12), %s5941_s26, 256, %s5939_s11, %s2884_s4  }
 0x301 PF: > { %s2929_s6 = sand.u32 1, %s4058_s12   ;;  %p6745_p7 = scmp.ne.s32.totalorder %s6250_s19, 0 }
 0x302   : > { %p6746_p9 = scmp.ge.s32.totalorder %s4070_s15, 2  ;;  %s2930_s7 = scalar_lea.sflag [#allocation4], %s2929_s6 }
 0x304   : > { %p3861_p2 = pnand %p6746_p9, %p6745_p7 }
 0x306   : > { %4049 = dma.done.wait (!%p3861_p2), %s2930_s7, 256  }
 0x307   : > { %4051 = vsyncadd (!%p3861_p2), %s2930_s7, 4294967040  ;;  %s2939_s20 = scalar_lea.sflag [#allocation9], %s2929_s6 }
 0x308   : > { %4053 = dma.done.wait (!%p3861_p2), %s2939_s20, 256  }
 0x309   : > { %4055 = vsyncadd (!%p3861_p2), %s2939_s20, 4294967040  ;;  %p21_p12 = scmp.ge.s32.totalorder %s4154_s24, 4   ;;  %s6747_s12 = smov %s4062_s13 }
 0x30a   : > { %s6748_s13 = smov %s4066_s14  ;;  %s6749_s14 = smov %s4185_s17 }
 0x30b   : > { %s6750_s15 = smov %s4154_s24  ;;  %23 = sbr.rel (!%p21_p12) target bundleno = 8 (0x8), region = 94 }
 0x312   :  { %2944 = vsyncpa [#allocation3], 1 }
 0x313   :  { %2946 = vsyncpa [#allocation3 + $0x1], 1 }
 0x314   :  { %2947 = vsyncpa [#allocation6], 1 }
 0x315   :  { %2948 = vsyncpa [#allocation4], 1 }
 0x316   :  { %2950 = vsyncpa [#allocation4 + $0x1], 1 }
 0x317   :  { %2951 = vsyncpa [#allocation9], 1 }
 0x318   :  { %2953 = vsyncpa [#allocation9 + $0x1], 1 }

</bundles_post_ra>
